<compile_context>
chip_gen: v7x
topology: tpu7x:2x2x1
jax: 0.10.0
libtpu: 0.0.40
codegen_flags: <defaults>
</compile_context>

<pallas_src>
import numpy as np
import jax
import jax.numpy as jnp
from jax import lax
from jax.experimental import pallas as pl
from jax.experimental.pallas import tpu as pltpu


# ---------------------------------------------------------------------------
# Host-side parameter preparation (done once per weight set).
# ---------------------------------------------------------------------------

def expand_conv3x3x3_weight(w_kkkio, H, W):
    """Expand a (3,3,3,Cin,Cout) conv weight into 3 depth-tap block-Toeplitz
    matrices of shape (3, H*W*Cin, H*W*Cout).

    With each depth slice flattened to a lane-dense slab x[d] of length
    H*W*Cin, the 3x3x3 "same" convolution becomes

        out[d] = x[d-1] @ M[0] + x[d] @ M[1] + x[d+1] @ M[2]

    (zero rows for d-1 < 0 / d+1 >= D).  The spatial (H, W) zero padding is
    encoded directly in the Toeplitz structure, so no explicit halo padding of
    H/W is needed anywhere.
    """
    kD, kH, kW, cin, cout = w_kkkio.shape
    w_np = np.asarray(w_kkkio, dtype=np.float32)
    M = np.zeros((kD, H * W * cin, H * W * cout), np.float32)
    for kd in range(kD):
        for kh in range(kH):
            for kw in range(kW):
                blk = w_np[kd, kh, kw]                       # (cin, cout)
                for ho in range(H):
                    hi = ho + kh - 1
                    if hi < 0 or hi >= H:
                        continue
                    for wo in range(W):
                        wi = wo + kw - 1
                        if wi < 0 or wi >= W:
                            continue
                        r = (hi * W + wi) * cin
                        c = (ho * W + wo) * cout
                        M[kd, r:r + cin, c:c + cout] = blk
    return jnp.asarray(M)


# ---------------------------------------------------------------------------
# Fused kernel: relu(bn2(conv2(relu(bn1(conv1(x))))) + x), one sample / step.
# ---------------------------------------------------------------------------

def fused_basic_block_kernel(x_ref, w1_ref, s1_ref, b1_ref,
                             w2_ref, s2_ref, b2_ref,
                             o_ref, xp_ref, hp_ref):
    D = o_ref.shape[0]
    f32 = jnp.float32

    x = x_ref[...].astype(f32)                     # (D, H*W*Cin) lane-dense slab

    # --- conv1 + bn1 + relu -------------------------------------------------
    # Depth halo lives in a zero-initialized VMEM scratch (no HBM padding).
    xp_ref[...] = jnp.zeros_like(xp_ref)
    xp_ref[1:D + 1, :] = x
    xp = xp_ref[...]                               # (D+2, H*W*Cin)

    acc = jnp.dot(xp[0:D, :], w1_ref[0], preferred_element_type=f32)
    acc = acc + jnp.dot(xp[1:D + 1, :], w1_ref[1], preferred_element_type=f32)
    acc = acc + jnp.dot(xp[2:D + 2, :], w1_ref[2], preferred_element_type=f32)
    h = jnp.maximum(acc * s1_ref[...] + b1_ref[...], 0.0)     # (D, H*W*Cmid)

    # --- conv2 + bn2 + residual + relu ---------------------------------------
    # Intermediate out1 stays in VMEM with its 1-slice depth halo.
    hp_ref[...] = jnp.zeros_like(hp_ref)
    hp_ref[1:D + 1, :] = h
    hp = hp_ref[...]                               # (D+2, H*W*Cmid)

    acc2 = jnp.dot(hp[0:D, :], w2_ref[0], preferred_element_type=f32)
    acc2 = acc2 + jnp.dot(hp[1:D + 1, :], w2_ref[1], preferred_element_type=f32)
    acc2 = acc2 + jnp.dot(hp[2:D + 2, :], w2_ref[2], preferred_element_type=f32)

    y = acc2 * s2_ref[...] + b2_ref[...] + x       # residual (identity path)
    o_ref[...] = jnp.maximum(y, 0.0).astype(o_ref.dtype)


# ---------------------------------------------------------------------------
# Wrapper: NCDHW in / NCDHW out.
# ---------------------------------------------------------------------------

def basic_block_forward(x_ncdhw, p):
    N, C, D, H, W = x_ncdhw.shape
    hwc_in = H * W * C
    hwc_mid = p["s1"].shape[-1]
    hwc_out = p["s2"].shape[-1]

    # NCDHW -> lane-dense (N, D, H*W*C) slab (layout glue only).
    x_slab = jnp.transpose(x_ncdhw, (0, 2, 3, 4, 1)).reshape(N, D, hwc_in)

    flops = int(2 * N * D * 3 * (hwc_in * hwc_mid + hwc_mid * hwc_out))
    bytes_accessed = int(4 * (N * D * hwc_in + N * D * hwc_out
                              + p["w1e"].size + p["w2e"].size
                              + p["s1"].size + p["b1"].size
                              + p["s2"].size + p["b2"].size))

    out_slab = pl.pallas_call(
        fused_basic_block_kernel,
        out_shape=jax.ShapeDtypeStruct((N, D, hwc_out), jnp.float32),
        grid_spec=pltpu.PrefetchScalarGridSpec(
            num_scalar_prefetch=0,
            grid=(N,),
            in_specs=[
                pl.BlockSpec((None, D, hwc_in), lambda n: (n, 0, 0)),
                pl.BlockSpec((3, hwc_in, hwc_mid), lambda n: (0, 0, 0)),
                pl.BlockSpec((1, hwc_mid), lambda n: (0, 0)),
                pl.BlockSpec((1, hwc_mid), lambda n: (0, 0)),
                pl.BlockSpec((3, hwc_mid, hwc_out), lambda n: (0, 0, 0)),
                pl.BlockSpec((1, hwc_out), lambda n: (0, 0)),
                pl.BlockSpec((1, hwc_out), lambda n: (0, 0)),
            ],
            out_specs=pl.BlockSpec((None, D, hwc_out), lambda n: (n, 0, 0)),
            scratch_shapes=[
                pltpu.VMEM((D + 2, hwc_in), jnp.float32),   # padded input slab
                pltpu.VMEM((D + 2, hwc_mid), jnp.float32),  # padded out1 slab
            ],
        ),
        compiler_params=pltpu.CompilerParams(
            dimension_semantics=("parallel",)),
        cost_estimate=pl.CostEstimate(
            flops=flops, transcendentals=0, bytes_accessed=bytes_accessed),
    )(x_slab, p["w1e"], p["s1"], p["b1"], p["w2e"], p["s2"], p["b2"])

    cout = hwc_out // (H * W)
    out = out_slab.reshape(N, D, H, W, cout)
    return jnp.transpose(out, (0, 4, 1, 2, 3))     # NDHWC slab -> NCDHW


# ---------------------------------------------------------------------------
# Pure-JAX reference (same inference-mode BN folding).
# ---------------------------------------------------------------------------

def _ref_forward(x_ncdhw, p):
    x = jnp.transpose(x_ncdhw, (0, 2, 3, 4, 1))
    dn = ("NDHWC", "DHWIO", "NDHWC")

    def conv(v, w):
        return lax.conv_general_dilated(v, w, (1, 1, 1), [(1, 1)] * 3,
                                        dimension_numbers=dn)

    def aff(v, s, b):
        return v * s.reshape(1, 1, 1, 1, -1) + b.reshape(1, 1, 1, 1, -1)

    o = jnp.maximum(aff(conv(x, p["w1"]), p["s1"], p["b1"]), 0.0)
    o = aff(conv(o, p["w2"]), p["s2"], p["b2"])
    o = jnp.maximum(o + x, 0.0)
    return jnp.transpose(o, (0, 4, 1, 2, 3))


if __name__ == "__main__":
    inplanes = planes = 4
    N, D, H, W = 2, 8, 8, 8
    eps = 1e-5

    key = jax.random.PRNGKey(0)
    keys = jax.random.split(key, 11)

    # Conv weights, generated in PyTorch layout (Cout, Cin, kD, kH, kW) then
    # transposed to (kD, kH, kW, Cin, Cout).
    w1_t = jax.random.normal(keys[0], (planes, inplanes, 3, 3, 3), jnp.float32) * 0.1
    w2_t = jax.random.normal(keys[1], (planes, planes, 3, 3, 3), jnp.float32) * 0.1
    w1 = jnp.transpose(w1_t, (2, 3, 4, 1, 0))
    w2 = jnp.transpose(w2_t, (2, 3, 4, 1, 0))

    def bn_fold(kg, kb, km, kv, c):
        gamma = 1.0 + 0.1 * jax.random.normal(kg, (c,), jnp.float32)
        beta = 0.1 * jax.random.normal(kb, (c,), jnp.float32)
        mean = 0.1 * jax.random.normal(km, (c,), jnp.float32)
        var = jax.random.uniform(kv, (c,), jnp.float32, minval=0.5, maxval=1.5)
        scale = gamma / jnp.sqrt(var + eps)
        bias = beta - mean * scale
        return scale, bias

    s1, b1 = bn_fold(keys[2], keys[3], keys[4], keys[5], planes)
    s2, b2 = bn_fold(keys[6], keys[7], keys[8], keys[9], planes)

    # Kernel params: block-Toeplitz expanded weights + lane-padded scale/bias.
    params = {
        "w1e": expand_conv3x3x3_weight(w1, H, W),          # (3, 256, 256)
        "w2e": expand_conv3x3x3_weight(w2, H, W),          # (3, 256, 256)
        "s1": jnp.tile(s1, H * W).reshape(1, -1),          # (1, 256)
        "b1": jnp.tile(b1, H * W).reshape(1, -1),
        "s2": jnp.tile(s2, H * W).reshape(1, -1),
        "b2": jnp.tile(b2, H * W).reshape(1, -1),
    }
    ref_params = {"w1": w1, "w2": w2, "s1": s1, "b1": b1, "s2": s2, "b2": b2}

    x = jax.random.normal(keys[10], (N, inplanes, D, H, W), jnp.float32)

    out = jax.block_until_ready(basic_block_forward(x, params))
    ref = _ref_forward(x, ref_params)

    assert out.shape == (N, planes, D, H, W)
    err = float(jnp.max(jnp.abs(out - ref)))
    if err > 1e-4:
        raise AssertionError(f"kernel/reference mismatch: max abs err = {err}")
    print("KERNEL_OK")
</pallas_src>

<mosaic_0001>
module attributes {stable_mosaic.version = 11 : i64} {
  func.func @fused_basic_block_kernel(%arg0: i32, %arg1: memref<1x8x256xf32, #tpu.memory_space<vmem>>, %arg2: memref<3x256x256xf32, #tpu.memory_space<vmem>>, %arg3: memref<1x256xf32, #tpu.memory_space<vmem>>, %arg4: memref<1x256xf32, #tpu.memory_space<vmem>>, %arg5: memref<3x256x256xf32, #tpu.memory_space<vmem>>, %arg6: memref<1x256xf32, #tpu.memory_space<vmem>>, %arg7: memref<1x256xf32, #tpu.memory_space<vmem>>, %arg8: memref<1x8x256xf32, #tpu.memory_space<vmem>>, %arg9: memref<10x256xf32, #tpu.memory_space<vmem>>, %arg10: memref<10x256xf32, #tpu.memory_space<vmem>>) attributes {dimension_semantics = [#tpu.dimension_semantics<parallel>], iteration_bounds = array<i64: 2>, scalar_prefetch = 0 : i64, scratch_operands = 2 : i64, tpu.core_type = #tpu.core_type<tc>, window_params = [{transform_indices = @transform_0, window_bounds = array<i64: 1, 8, 256>}, {pipeline_mode = #tpu.pipeline_mode<synchronous>, transform_indices = @transform_1, window_bounds = array<i64: 3, 256, 256>}, {pipeline_mode = #tpu.pipeline_mode<synchronous>, transform_indices = @transform_2, window_bounds = array<i64: 1, 256>}, {pipeline_mode = #tpu.pipeline_mode<synchronous>, transform_indices = @transform_3, window_bounds = array<i64: 1, 256>}, {pipeline_mode = #tpu.pipeline_mode<synchronous>, transform_indices = @transform_4, window_bounds = array<i64: 3, 256, 256>}, {pipeline_mode = #tpu.pipeline_mode<synchronous>, transform_indices = @transform_5, window_bounds = array<i64: 1, 256>}, {pipeline_mode = #tpu.pipeline_mode<synchronous>, transform_indices = @transform_6, window_bounds = array<i64: 1, 256>}, {transform_indices = @transform_7, window_bounds = array<i64: 1, 8, 256>}]} {
    %c0 = arith.constant 0 : index
    %c0_0 = arith.constant 0 : index
    %c0_1 = arith.constant 0 : index
    %0 = vector.load %arg1[%c0, %c0_0, %c0_1] : memref<1x8x256xf32, #tpu.memory_space<vmem>>, vector<1x8x256xf32>
    %1 = vector.shape_cast %0 : vector<1x8x256xf32> to vector<8x256xf32>
    %cst = arith.constant 0.000000e+00 : f32
    %2 = vector.broadcast %cst : f32 to vector<10x256xf32>
    %c0_2 = arith.constant 0 : index
    %c0_3 = arith.constant 0 : index
    %3 = vector.load %arg9[%c0_2, %c0_3] : memref<10x256xf32, #tpu.memory_space<vmem>>, vector<10x256xf32>
    tpu.vector_store %arg9[%c0_2, %c0_3], %2 {strides = array<i32>} : memref<10x256xf32, #tpu.memory_space<vmem>>, vector<10x256xf32>,
    %c1 = arith.constant 1 : index
    %c0_4 = arith.constant 0 : index
    %4 = vector.load %arg9[%c1, %c0_4] : memref<10x256xf32, #tpu.memory_space<vmem>>, vector<8x256xf32>
    tpu.vector_store %arg9[%c1, %c0_4], %1 {strides = array<i32>} : memref<10x256xf32, #tpu.memory_space<vmem>>, vector<8x256xf32>,
    %c0_5 = arith.constant 0 : index
    %c0_6 = arith.constant 0 : index
    %5 = vector.load %arg9[%c0_5, %c0_6] : memref<10x256xf32, #tpu.memory_space<vmem>>, vector<10x256xf32>
    %6 = vector.extract_strided_slice %5 {offsets = [0, 0], sizes = [8, 256], strides = [1, 1]} : vector<10x256xf32> to vector<8x256xf32>
    %c0_7 = arith.constant 0 : index
    %c0_8 = arith.constant 0 : index
    %c0_9 = arith.constant 0 : index
    %7 = vector.load %arg2[%c0_7, %c0_8, %c0_9] : memref<3x256x256xf32, #tpu.memory_space<vmem>>, vector<1x256x256xf32>
    %8 = vector.shape_cast %7 : vector<1x256x256xf32> to vector<256x256xf32>
    %cst_10 = arith.constant dense<0.000000e+00> : vector<8x256xf32>
    %9 = tpu.matmul %6, %8, %cst_10 {dimension_numbers = #tpu.dot_dimension_numbers<[1], [0], [0], [1], [0, 0, 1, 1], [], []>} : vector<8x256xf32>, vector<256x256xf32>, vector<8x256xf32> -> vector<8x256xf32>
    %10 = vector.extract_strided_slice %5 {offsets = [1, 0], sizes = [8, 256], strides = [1, 1]} : vector<10x256xf32> to vector<8x256xf32>
    %c1_11 = arith.constant 1 : index
    %c0_12 = arith.constant 0 : index
    %c0_13 = arith.constant 0 : index
    %11 = vector.load %arg2[%c1_11, %c0_12, %c0_13] : memref<3x256x256xf32, #tpu.memory_space<vmem>>, vector<1x256x256xf32>
    %12 = vector.shape_cast %11 : vector<1x256x256xf32> to vector<256x256xf32>
    %cst_14 = arith.constant dense<0.000000e+00> : vector<8x256xf32>
    %13 = tpu.matmul %10, %12, %cst_14 {dimension_numbers = #tpu.dot_dimension_numbers<[1], [0], [0], [1], [0, 0, 1, 1], [], []>} : vector<8x256xf32>, vector<256x256xf32>, vector<8x256xf32> -> vector<8x256xf32>
    %14 = arith.addf %9, %13 : vector<8x256xf32>
    %15 = vector.extract_strided_slice %5 {offsets = [2, 0], sizes = [8, 256], strides = [1, 1]} : vector<10x256xf32> to vector<8x256xf32>
    %c2 = arith.constant 2 : index
    %c0_15 = arith.constant 0 : index
    %c0_16 = arith.constant 0 : index
    %16 = vector.load %arg2[%c2, %c0_15, %c0_16] : memref<3x256x256xf32, #tpu.memory_space<vmem>>, vector<1x256x256xf32>
    %17 = vector.shape_cast %16 : vector<1x256x256xf32> to vector<256x256xf32>
    %cst_17 = arith.constant dense<0.000000e+00> : vector<8x256xf32>
    %18 = tpu.matmul %15, %17, %cst_17 {dimension_numbers = #tpu.dot_dimension_numbers<[1], [0], [0], [1], [0, 0, 1, 1], [], []>} : vector<8x256xf32>, vector<256x256xf32>, vector<8x256xf32> -> vector<8x256xf32>
    %19 = arith.addf %14, %18 : vector<8x256xf32>
    %c0_18 = arith.constant 0 : index
    %c0_19 = arith.constant 0 : index
    %20 = vector.load %arg3[%c0_18, %c0_19] : memref<1x256xf32, #tpu.memory_space<vmem>>, vector<1x256xf32>
    %21 = vector.broadcast %20 : vector<1x256xf32> to vector<8x256xf32>
    %22 = arith.mulf %19, %21 : vector<8x256xf32>
    %c0_20 = arith.constant 0 : index
    %c0_21 = arith.constant 0 : index
    %23 = vector.load %arg4[%c0_20, %c0_21] : memref<1x256xf32, #tpu.memory_space<vmem>>, vector<1x256xf32>
    %24 = vector.broadcast %23 : vector<1x256xf32> to vector<8x256xf32>
    %25 = arith.addf %22, %24 : vector<8x256xf32>
    %cst_22 = arith.constant 0.000000e+00 : f32
    %26 = vector.broadcast %cst_22 : f32 to vector<8x256xf32>
    %27 = arith.maximumf %25, %26 : vector<8x256xf32>
    %cst_23 = arith.constant 0.000000e+00 : f32
    %28 = vector.broadcast %cst_23 : f32 to vector<10x256xf32>
    %c0_24 = arith.constant 0 : index
    %c0_25 = arith.constant 0 : index
    %29 = vector.load %arg10[%c0_24, %c0_25] : memref<10x256xf32, #tpu.memory_space<vmem>>, vector<10x256xf32>
    tpu.vector_store %arg10[%c0_24, %c0_25], %28 {strides = array<i32>} : memref<10x256xf32, #tpu.memory_space<vmem>>, vector<10x256xf32>,
    %c1_26 = arith.constant 1 : index
    %c0_27 = arith.constant 0 : index
    %30 = vector.load %arg10[%c1_26, %c0_27] : memref<10x256xf32, #tpu.memory_space<vmem>>, vector<8x256xf32>
    tpu.vector_store %arg10[%c1_26, %c0_27], %27 {strides = array<i32>} : memref<10x256xf32, #tpu.memory_space<vmem>>, vector<8x256xf32>,
    %c0_28 = arith.constant 0 : index
    %c0_29 = arith.constant 0 : index
    %31 = vector.load %arg10[%c0_28, %c0_29] : memref<10x256xf32, #tpu.memory_space<vmem>>, vector<10x256xf32>
    %32 = vector.extract_strided_slice %31 {offsets = [0, 0], sizes = [8, 256], strides = [1, 1]} : vector<10x256xf32> to vector<8x256xf32>
    %c0_30 = arith.constant 0 : index
    %c0_31 = arith.constant 0 : index
    %c0_32 = arith.constant 0 : index
    %33 = vector.load %arg5[%c0_30, %c0_31, %c0_32] : memref<3x256x256xf32, #tpu.memory_space<vmem>>, vector<1x256x256xf32>
    %34 = vector.shape_cast %33 : vector<1x256x256xf32> to vector<256x256xf32>
    %cst_33 = arith.constant dense<0.000000e+00> : vector<8x256xf32>
    %35 = tpu.matmul %32, %34, %cst_33 {dimension_numbers = #tpu.dot_dimension_numbers<[1], [0], [0], [1], [0, 0, 1, 1], [], []>} : vector<8x256xf32>, vector<256x256xf32>, vector<8x256xf32> -> vector<8x256xf32>
    %36 = vector.extract_strided_slice %31 {offsets = [1, 0], sizes = [8, 256], strides = [1, 1]} : vector<10x256xf32> to vector<8x256xf32>
    %c1_34 = arith.constant 1 : index
    %c0_35 = arith.constant 0 : index
    %c0_36 = arith.constant 0 : index
    %37 = vector.load %arg5[%c1_34, %c0_35, %c0_36] : memref<3x256x256xf32, #tpu.memory_space<vmem>>, vector<1x256x256xf32>
    %38 = vector.shape_cast %37 : vector<1x256x256xf32> to vector<256x256xf32>
    %cst_37 = arith.constant dense<0.000000e+00> : vector<8x256xf32>
    %39 = tpu.matmul %36, %38, %cst_37 {dimension_numbers = #tpu.dot_dimension_numbers<[1], [0], [0], [1], [0, 0, 1, 1], [], []>} : vector<8x256xf32>, vector<256x256xf32>, vector<8x256xf32> -> vector<8x256xf32>
    %40 = arith.addf %35, %39 : vector<8x256xf32>
    %41 = vector.extract_strided_slice %31 {offsets = [2, 0], sizes = [8, 256], strides = [1, 1]} : vector<10x256xf32> to vector<8x256xf32>
    %c2_38 = arith.constant 2 : index
    %c0_39 = arith.constant 0 : index
    %c0_40 = arith.constant 0 : index
    %42 = vector.load %arg5[%c2_38, %c0_39, %c0_40] : memref<3x256x256xf32, #tpu.memory_space<vmem>>, vector<1x256x256xf32>
    %43 = vector.shape_cast %42 : vector<1x256x256xf32> to vector<256x256xf32>
    %cst_41 = arith.constant dense<0.000000e+00> : vector<8x256xf32>
    %44 = tpu.matmul %41, %43, %cst_41 {dimension_numbers = #tpu.dot_dimension_numbers<[1], [0], [0], [1], [0, 0, 1, 1], [], []>} : vector<8x256xf32>, vector<256x256xf32>, vector<8x256xf32> -> vector<8x256xf32>
    %45 = arith.addf %40, %44 : vector<8x256xf32>
    %c0_42 = arith.constant 0 : index
    %c0_43 = arith.constant 0 : index
    %46 = vector.load %arg6[%c0_42, %c0_43] : memref<1x256xf32, #tpu.memory_space<vmem>>, vector<1x256xf32>
    %47 = vector.broadcast %46 : vector<1x256xf32> to vector<8x256xf32>
    %48 = arith.mulf %45, %47 : vector<8x256xf32>
    %c0_44 = arith.constant 0 : index
    %c0_45 = arith.constant 0 : index
    %49 = vector.load %arg7[%c0_44, %c0_45] : memref<1x256xf32, #tpu.memory_space<vmem>>, vector<1x256xf32>
    %50 = vector.broadcast %49 : vector<1x256xf32> to vector<8x256xf32>
    %51 = arith.addf %48, %50 : vector<8x256xf32>
    %52 = arith.addf %51, %1 : vector<8x256xf32>
    %cst_46 = arith.constant 0.000000e+00 : f32
    %53 = vector.broadcast %cst_46 : f32 to vector<8x256xf32>
    %54 = arith.maximumf %52, %53 : vector<8x256xf32>
    %c0_47 = arith.constant 0 : index
    %c0_48 = arith.constant 0 : index
    %c0_49 = arith.constant 0 : index
    %55 = vector.load %arg8[%c0_47, %c0_48, %c0_49] : memref<1x8x256xf32, #tpu.memory_space<vmem>>, vector<1x8x256xf32>
    %56 = vector.shape_cast %55 : vector<1x8x256xf32> to vector<8x256xf32>
    %57 = vector.shape_cast %54 : vector<8x256xf32> to vector<1x8x256xf32>
    tpu.vector_store %arg8[%c0_47, %c0_48, %c0_49], %57 {strides = array<i32>} : memref<1x8x256xf32, #tpu.memory_space<vmem>>, vector<1x8x256xf32>,
    return
  }
  func.func @transform_0(%arg0: i32) -> (i32, i32, i32) {
    %c0_i32 = arith.constant 0 : i32
    %c0_i32_0 = arith.constant 0 : i32
    %c0_i32_1 = arith.constant 0 : i32
    return %arg0, %c0_i32, %c0_i32_0 : i32, i32, i32
  }
  func.func @transform_1(%arg0: i32) -> (i32, i32, i32) {
    %c0_i32 = arith.constant 0 : i32
    %c0_i32_0 = arith.constant 0 : i32
    %c0_i32_1 = arith.constant 0 : i32
    %c0_i32_2 = arith.constant 0 : i32
    return %c0_i32, %c0_i32_0, %c0_i32_1 : i32, i32, i32
  }
  func.func @transform_2(%arg0: i32) -> (i32, i32) {
    %c0_i32 = arith.constant 0 : i32
    %c0_i32_0 = arith.constant 0 : i32
    %c0_i32_1 = arith.constant 0 : i32
    return %c0_i32, %c0_i32_0 : i32, i32
  }
  func.func @transform_3(%arg0: i32) -> (i32, i32) {
    %c0_i32 = arith.constant 0 : i32
    %c0_i32_0 = arith.constant 0 : i32
    %c0_i32_1 = arith.constant 0 : i32
    return %c0_i32, %c0_i32_0 : i32, i32
  }
  func.func @transform_4(%arg0: i32) -> (i32, i32, i32) {
    %c0_i32 = arith.constant 0 : i32
    %c0_i32_0 = arith.constant 0 : i32
    %c0_i32_1 = arith.constant 0 : i32
    %c0_i32_2 = arith.constant 0 : i32
    return %c0_i32, %c0_i32_0, %c0_i32_1 : i32, i32, i32
  }
  func.func @transform_5(%arg0: i32) -> (i32, i32) {
    %c0_i32 = arith.constant 0 : i32
    %c0_i32_0 = arith.constant 0 : i32
    %c0_i32_1 = arith.constant 0 : i32
    return %c0_i32, %c0_i32_0 : i32, i32
  }
  func.func @transform_6(%arg0: i32) -> (i32, i32) {
    %c0_i32 = arith.constant 0 : i32
    %c0_i32_0 = arith.constant 0 : i32
    %c0_i32_1 = arith.constant 0 : i32
    return %c0_i32, %c0_i32_0 : i32, i32
  }
  func.func @transform_7(%arg0: i32) -> (i32, i32, i32) {
    %c0_i32 = arith.constant 0 : i32
    %c0_i32_0 = arith.constant 0 : i32
    %c0_i32_1 = arith.constant 0 : i32
    return %arg0, %c0_i32, %c0_i32_0 : i32, i32, i32
  }
}

</mosaic_0001>

<bundles_post_ra>
// kernel: tpu_custom_call.1
= control target key start
LH: loop header
LB: loop body
LE: loop exit
PB: predicated region body
PF: predicated region fallthrough
CT: control target
= control target key end

     0   :  { %12 = vsyncpa [#allocation5], 0  ;;  %s2383_s0 = inlined_call_operand.hbm [shape: f32[2,8,256], index: 0, kind: input, shape index: {}]   ;;  %s2384_s1 = inlined_call_operand.hbm [shape: f32[3,256,256], index: 1, kind: input, shape index: {}]   ;;  %s2385_s2 = inlined_call_operand.vmem [shape: f32[1,256], index: 2, kind: input, shape index: {}]   ;;  %s2386_s3 = inlined_call_operand.vmem [shape: f32[1,256], index: 3, kind: input, shape index: {}]   ;;  %s2387_s4 = inlined_call_operand.hbm [shape: f32[3,256,256], index: 4, kind: input, shape index: {}]   ;;  %s2388_s5 = inlined_call_operand.vmem [shape: f32[1,256], index: 5, kind: input, shape index: {}]   ;;  %s2389_s6 = inlined_call_operand.vmem [shape: f32[1,256], index: 6, kind: input, shape index: {}]   ;;  %s2390_s7 = inlined_call_operand.hbm [shape: f32[2,8,256], index: 7, kind: output, shape index: {}]  }
   0x1   :  { %14 = vsyncpa [#allocation5 + $0x1], 0 }
   0x2   :  { %15 = vsyncpa [#allocation8], 0 }
   0x3   :  { %16 = vsyncpa [#allocation6], 0 }
   0x4   :  { %18 = vsyncpa [#allocation6 + $0x1], 0  ;;  %s2079_s24 = smov 0   ;;  %s2081_s25 = smov 0  }
   0x5   :  { %s2083_s26 = smov 0   ;;  %s2085_s27 = smov 0  }
   0x6 LB: > { %s2100_s28 = sadd.s32 4294967295, %s2030_s27   ;;  %s1390_s29 = sadd.s32 4294967294, %s2030_s27   ;;  %s2030_s27 = sphi %s2085_s27, %s2410_s27   ;;  %s2026_s26 = sphi %s2083_s26, %s2409_s26   ;;  %s2022_s25 = sphi %s2081_s25, %s2408_s25   ;;  %s2018_s24 = sphi %s2079_s24, %s2407_s24  }
   0x7   : > { %p44_p0 = scmp.ne.s32.totalorder %s2022_s25, %s2018_s24  ;;  %p2391_p1 = scmp.eq.s32.totalorder %s2100_s28, 0 }
   0x8   : > { %p200_p3 = scmp.eq.s32.totalorder %s1390_s29, 1  ;;  %p1391_p5 = scmp.ge.s32.totalorder %s2030_s27, 1 }
   0x9   : > { %p2109_p4 = por %p2391_p1, %p44_p0  ;;  %p207_p7 = scmp.lt.s32.totalorder %s2030_s27, 3 }
   0xa   : > { %p2114_p6 = por %p200_p3, %p44_p0  ;;  %s2032_s10 = smov [#allocation7]  }
   0xb   : > { %s2394_s30 = scalar_select %p2109_p4, 1, 0 }
   0xc   : > { %s2395_s8 = scalar_select %p2114_p6, 1, 0 }
   0xd   : > { %p2119_p8 = pnand %p1391_p5, %p207_p7  ;;  %s219_s11 = sshll.u32 %s2032_s10, 4  ;;  %s2123_s11 = int_to_ptr.vmem [resolvable:$true] %s219_s11 }
   0xe   : > { %s2033_s13 = smov [#allocation9]   ;;  %s1874_s17 = scalar_lea.hbm %s2384_s1, 24576 }
   0xf   : > { %p1814_p9 = pneg %p2119_p8  ;;  %s238_s14 = sshll.u32 %s2033_s13, 4  ;;  %s2134_s14 = int_to_ptr.vmem [resolvable:$true] %s238_s14 }
  0x10   : > { %p1875_p12 = scmp.ne.s32.totalorder %s2384_s1, %s1874_s17  ;;  %p1881_p5 = scmp.lt.u32.totalorder %s1874_s17, %s2384_s1 }
  0x11   : > { %p2130_p11 = pnand %p1814_p9, %p2391_p1 }
  0x13   : > { %p1876_p13 = pneg %p2130_p11 }
  0x15   : > { %p1877_p0 = pnand %p1876_p13, %p1875_p12 }
  0x17   : > { %p1878_p3 = pneg %p1877_p0 }
  0x19   : > { %p1883_p7 = pnand %p1881_p5, %p1878_p3 }
  0x1b   : > { %1886 = shalt.err (!%p1883_p7)
}
  0x1c   : > { %s1887_s22 = scalar_lea.vmem %s2123_s11, 24576  ;;  %p1895_p2 = scmp.lt.s32.totalorder %s2123_s11, %s2123_s11 }
  0x1d   : > { %p1888_p9 = scmp.ne.s32.totalorder %s2123_s11, %s1887_s22  ;;  %p1896_p12 = scmp.lt.s32.totalorder %s1887_s22, %s1887_s22 }
  0x1f   : > { %p1890_p10 = pnand %p1888_p9, %p1876_p13  ;;  %p1897_p0 = por %p1896_p12, %p1895_p2 }
  0x21   : > { %p1891_p1 = pneg %p1890_p10 }
  0x23   : > { %p1898_p6 = pnand %p1897_p0, %p1891_p1 }
  0x25   : > { %1901 = shalt.err (!%p1898_p6)
}
  0x26   : > { %s2034_s23 = smov 256   ;;  %s2035_s29 = smov 16  }
  0x27   : > { %1817 = dma.hbm_to_vmem [thread:$0]  (!%p2130_p11), %s2384_s1, 24576, %s2123_s11, [#allocation8], %s2034_s23, %s2034_s23, %s2035_s29  }
  0x28   : > { %s1902_s17 = scalar_lea.hbm %s2387_s4, 24576 }
  0x29   : > { %p1903_p2 = scmp.ne.s32.totalorder %s2387_s4, %s1902_s17  ;;  %p1909_p10 = scmp.lt.u32.totalorder %s1902_s17, %s2387_s4 }
  0x2b   : > { %p1905_p1 = pnand %p1903_p2, %p1876_p13 }
  0x2d   : > { %p1906_p6 = pneg %p1905_p1 }
  0x2f   : > { %p1911_p3 = pnand %p1909_p10, %p1906_p6 }
  0x31   : > { %1914 = shalt.err (!%p1911_p3)
}
  0x32   : > { %s1915_s11 = scalar_lea.vmem %s2134_s14, 24576  ;;  %p1923_p12 = scmp.lt.s32.totalorder %s2134_s14, %s2134_s14 }
  0x33   : > { %p1916_p5 = scmp.ne.s32.totalorder %s2134_s14, %s1915_s11  ;;  %p1924_p0 = scmp.lt.s32.totalorder %s1915_s11, %s1915_s11 }
  0x35   : > { %p1918_p7 = pnand %p1916_p5, %p1876_p13  ;;  %p1925_p2 = por %p1924_p0, %p1923_p12 }
  0x37   : > { %p1919_p9 = pneg %p1918_p7 }
  0x39   : > { %p1926_p1 = pnand %p1925_p2, %p1919_p9 }
  0x3b   : > { %1929 = shalt.err (!%p1926_p1)
}
  0x3c   : > { %1820 = dma.hbm_to_vmem [thread:$0]  (!%p2130_p11), %s2387_s4, 24576, %s2134_s14, [#allocation8], %s2034_s23, %s2034_s23, %s2035_s29  }
  0x3d   : > { %s2189_s13 = sadd.s32 1, %s2030_s27   ;;  %s31_s12 = sadd.s32 1, %s2026_s26 }
  0x3e   : > { %s28_s15 = ssub.s32 %s2030_s27, %s2189_s13  ;;  %p38_p13 = scmp.ne.s32.totalorder %s2026_s26, %s2022_s25 }
  0x3f   : > { %p29_p6 = scmp.eq.s32.totalorder %s28_s15, 0  ;;  %p39_p10 = scmp.eq.s32.totalorder %s2030_s27, 0 }
  0x40   : > { %p2398_p3 = scmp.eq.s32.totalorder %s2100_s28, 1  ;;  %p1831_p7 = scmp.lt.s32.totalorder %s2030_s27, 2 }
  0x41   : > { %s2205_s17 = scalar_select %p29_p6, %s2026_s26, %s31_s12  }
  0x42   : > { %p2199_p5 = por %p2398_p3, %p38_p13  ;;  %p40_p9 = por %p39_p10, %p38_p13 }
  0x43   : > { %s258_s18 = sand.u32 1, %s2026_s26   ;;  %s1408_s14 = sshll.u32 %s2030_s27, 8 }
  0x44   : > { %s2399_s16 = scalar_select %p2199_p5, 1, 0 }
  0x45   : > { %s1395_s19 = sshll.u32 %s258_s18, 4  ;;  %s2212_s20 = scalar_lea.hbm %s2383_s0, %s1408_s14 }
  0x46   : > { %s262_s21 = scalar_lea.vmem [#allocation4], %s1395_s19  ;;  %p2216_p11 = pnand %p1831_p7, %p40_p9 }
  0x47   : > { %s270_s11 = sshll.u32 %s262_s21, 4  ;;  %s259_s10 = scalar_lea.sflag [#allocation5], %s258_s18  ;;  %s2214_s11 = int_to_ptr.vmem [resolvable:$true] %s270_s11 }
  0x48   : > { %s1930_s12 = scalar_lea.hbm %s2212_s20, 256  ;;  %p1932_p0 = pneg %p2216_p11 }
  0x49   : > { %p1931_p12 = scmp.ne.s32.totalorder %s2212_s20, %s1930_s12  ;;  %s1935_s14 = scalar_lea.hbm %s2383_s0, 512 }
  0x4a   : > { %p1936_p13 = scmp.lt.u32.totalorder %s2212_s20, %s2383_s0  ;;  %p1937_p6 = scmp.lt.u32.totalorder %s1935_s14, %s1930_s12 }
  0x4b   : > { %p1933_p2 = pnand %p1932_p0, %p1931_p12  ;;  %p1939_p3 = scmp.lt.u32.totalorder %s1930_s12, %s2212_s20 }
  0x4c   : > { %p1938_p10 = por %p1937_p6, %p1936_p13 }
  0x4d   : > { %p1934_p1 = pneg %p1933_p2 }
  0x4e   : > { %p1940_p7 = por %p1939_p3, %p1938_p10 }
  0x50   : > { %p1941_p9 = pnand %p1940_p7, %p1934_p1 }
  0x52   : > { %1944 = shalt.err (!%p1941_p9)
}
  0x53   : > { %s1945_s18 = scalar_lea.vmem %s2214_s11, 256  ;;  %s2036_s21 = smov [#allocation4]  }
  0x54   : > { %p1946_p12 = scmp.ne.s32.totalorder %s2214_s11, %s1945_s18  ;;  %s1950_s15 = sshll.u32 %s2036_s21, 4  ;;  %s1951_s15 = int_to_ptr.vmem [resolvable:$false] %s1950_s15 }
  0x55   : > { %s1952_s19 = scalar_lea.vmem %s1951_s15, 512  ;;  %p1953_p4 = scmp.lt.s32.totalorder %s2214_s11, %s1951_s15 }
  0x56   : > { %p1948_p2 = pnand %p1946_p12, %p1932_p0  ;;  %p1954_p13 = scmp.lt.s32.totalorder %s1952_s19, %s1945_s18 }
  0x58   : > { %p1949_p5 = pneg %p1948_p2  ;;  %p1955_p6 = por %p1954_p13, %p1953_p4 }
  0x5a   : > { %p1956_p10 = pnand %p1955_p6, %p1949_p5 }
  0x5c   : > { %1959 = shalt.err (!%p1956_p10)
}
  0x5d   : > { %1824 = dma.hbm_to_vmem [thread:$0]  (!%p2216_p11), %s2212_s20, 256, %s2214_s11, %s259_s10  }
  0x5e   : > { %279 = sbr.rel (%p2119_p8) target bundleno = 896 (0x380), region = 48  ;;  %s2248_s12 = sand.u32 (!%p2119_p8), 1, %s2022_s25  }
  0x5f   : > { %s1399_s14 = sshll.u32 (!%p2119_p8), %s2248_s12, 4  ;;  %s282_s23 = scalar_lea.sflag (!%p2119_p8), [#allocation5], %s2248_s12 }
  0x60   : > { %s2254_s29 = scalar_lea.vmem (!%p2119_p8), [#allocation4], %s1399_s14  ;;  %p2401_p4 = scmp.ne.s32.totalorder (!%p2119_p8), %s2394_s30, 0 }
  0x65   : > { %2005 = dma.done.wait (%p2401_p4), %s282_s23, 256  }
  0x66   : > { %2007 = vsyncadd (%p2401_p4), %s282_s23, 4294967040  ;;  %p2402_p5 = scmp.eq.s32.totalorder %s2100_s28, 0 }
  0x68   : > { %2009 = dma.done.wait (%p2402_p5), [#allocation8], 49152   ;;  %p2403_p8 = pmov %p2402_p5 }
  0x69   : > { %v2037_v0 = vmov 0.0   ;;  %v410_v1 = vld [vmem:[#allocation7 + $0x208] sm:$0xff]  ;;  %v412_v2 = vld [vmem:[#allocation7 + $0x218] sm:$0xff]  ;;  %v409_v3 = vld [vmem:[#allocation7 + $0x200] sm:$0xff]  ;;  %vm477_vm0 = vcmask 1046528   ;;  %vm693_vm1 = vcmask 1045504  }
  0x6a   : > { %2011 = vsyncadd (%p2403_p8), [#allocation8], 4294918144  ;;  %327 = vst [vmem:[#allocation2 + $0x8] sm:$0xff] %v2037_v0  ;;  %v1410_v4 = vpack.c.bf16 %v412_v2, %v410_v1  ;;  %v411_v5 = vld [vmem:[#allocation7 + $0x210] sm:$0xff]  ;;  %v414_v6 = vld [vmem:[#allocation7 + $0x228] sm:$0xff]  ;;  %s1409_s15 = sshll.u32 %s2100_s28, 8 }
  0x6b   : > { %329 = vst [vmem:[#allocation2 + $0x18] sm:$0x3] %v2037_v0  ;;  %326 = vst [vmem:[#allocation2] sm:$0xff] %v2037_v0  ;;  %v416_v7 = vld [vmem:[#allocation7 + $0x238] sm:$0xff]  ;;  %v1412_v8 = vpack.c.bf16 %v411_v5, %v409_v3  ;;  %v413_v10 = vld [vmem:[#allocation7 + $0x220] sm:$0xff]  ;;  %s323_s19 = scalar_lea.vmem [#allocation10], %s1399_s14  ;;  %s2339_s20 = scalar_lea.hbm %s2390_s7, %s1409_s15 }
  0x6c   : > { %328 = vst [vmem:[#allocation2 + $0x10] sm:$0x3] %v2037_v0  ;;  %805 = vst [vmem:[#allocation3] sm:$0xff] %v2037_v0  ;;  %v1414_v9 = vpack.c.bf16 %v416_v7, %v414_v6  ;;  %v415_v11 = vld [vmem:[#allocation7 + $0x230] sm:$0xff]  ;;  %v418_v12 = vld [vmem:[#allocation7 + $0x248] sm:$0xff]  ;;  %1411 = vmatprep.subr.bf16.mxu0 %v1410_v4  ;;  %s1301_s23 = sshll.u32 %s323_s19, 4  ;;  %s2341_s23 = int_to_ptr.vmem [resolvable:$true] %s1301_s23 }
  0x6d   : > { %806 = vst [vmem:[#allocation3 + $0x8] sm:$0xff] %v2037_v0  ;;  %807 = vst [vmem:[#allocation3 + $0x10] sm:$0x3] %v2037_v0  ;;  %v420_v13 = vld [vmem:[#allocation7 + $0x258] sm:$0xff]  ;;  %1413 = vmatpush1.bf16.msra.mxu0 %v1412_v8  ;;  %v1416_v14 = vpack.c.bf16 %v415_v11, %v413_v10  ;;  %v417_v16 = vld [vmem:[#allocation7 + $0x240] sm:$0xff]  ;;  %s1287_s28 = scalar_lea.sflag [#allocation6], %s2248_s12 }
  0x6e   : > { %808 = vst [vmem:[#allocation3 + $0x18] sm:$0x3] %v2037_v0  ;;  %1415 = vmatprep.subr.bf16.mxu0 %v1414_v9  ;;  %v1418_v15 = vpack.c.bf16 %v420_v13, %v418_v12  ;;  %v419_v17 = vld [vmem:[#allocation7 + $0x250] sm:$0xff]  ;;  %v422_v18 = vld [vmem:[#allocation7 + $0x268] sm:$0xff]  ;;  %v424_v19 = vld [vmem:[#allocation7 + $0x278] sm:$0xff]  ;;  %s1960_s11 = scalar_lea.vmem %s2341_s23, 256 }
  0x6f   : > { %v1420_v20 = vpack.c.bf16 %v419_v17, %v417_v16  ;;  %v1422_v21 = vpack.c.bf16 %v424_v19, %v422_v18  ;;  %v421_v22 = vld [vmem:[#allocation7 + $0x260] sm:$0xff]  ;;  %v423_v23 = vld [vmem:[#allocation7 + $0x270] sm:$0xff]  ;;  %v426_v24 = vld [vmem:[#allocation7 + $0x288] sm:$0xff]  ;;  %p1961_p11 = scmp.ne.s32.totalorder %s2341_s23, %s1960_s11  ;;  %p2404_p0 = scmp.ne.s32.totalorder %s2399_s16, 0 }
  0x70   : > { %v428_v25 = vld [vmem:[#allocation7 + $0x298] sm:$0xff]  ;;  %v1424_v26 = vpack.c.bf16 %v423_v23, %v421_v22  ;;  %v425_v28 = vld [vmem:[#allocation7 + $0x280] sm:$0xff]  ;;  %v427_v29 = vld [vmem:[#allocation7 + $0x290] sm:$0xff]  ;;  %s2038_s14 = smov [#allocation10]  }
  0x71   : > { %1417 = vmatpush1.bf16.msra.mxu0 %v1416_v14  ;;  %v1426_v27 = vpack.c.bf16 %v428_v25, %v426_v24  ;;  %v430_v30 = vld [vmem:[#allocation7 + $0x2a8] sm:$0xff]  ;;  %v432_v31 = vld [vmem:[#allocation7 + $0x2b8] sm:$0xff]  ;;  %v1428_v32 = vpack.c.bf16 %v427_v29, %v425_v28  ;;  %v429_v34 = vld [vmem:[#allocation7 + $0x2a0] sm:$0xff]  ;;  %p1962_p1 = pnand %p1961_p11, %p2404_p0 }
  0x72   : > { %1419 = vmatprep.subr.bf16.mxu0 %v1418_v15  ;;  %v1430_v33 = vpack.c.bf16 %v432_v31, %v430_v30  ;;  %v431_v35 = vld [vmem:[#allocation7 + $0x2b0] sm:$0xff]  ;;  %v434_v36 = vld [vmem:[#allocation7 + $0x2c8] sm:$0xff]  ;;  %v436_v37 = vld [vmem:[#allocation7 + $0x2d8] sm:$0xff] }
  0x73   : > { %v1432_v38 = vpack.c.bf16 %v431_v35, %v429_v34  ;;  %v1434_v39 = vpack.c.bf16 %v436_v37, %v434_v36  ;;  %v433_v40 = vld [vmem:[#allocation7 + $0x2c0] sm:$0xff]  ;;  %v435_v41 = vld [vmem:[#allocation7 + $0x2d0] sm:$0xff]  ;;  %v325_v42 = vld [vmem:[%s2254_s29 + $0x8] sm:$0xff]  ;;  %p1963_p3 = pneg %p1962_p1 }
  0x74   : > { %v438_v43 = vld [vmem:[#allocation7 + $0x2e8] sm:$0xff]  ;;  %v440_v44 = vld [vmem:[#allocation7 + $0x2f8] sm:$0xff]  ;;  %v333_v45 = vrot.slane %v325_v42, 7  ;;  %v324_v46 = vld [vmem:[%s2254_s29] sm:$0xff]  ;;  %v1436_v48 = vpack.c.bf16 %v435_v41, %v433_v40 }
  0x75   : > { %1421 = vmatpush1.bf16.msra.mxu0 %v1420_v20  ;;  %v332_v47 = vrot.slane %v324_v46, 7  ;;  %v1438_v49 = vpack.c.bf16 %v440_v44, %v438_v43  ;;  %v437_v50 = vld [vmem:[#allocation7 + $0x2e0] sm:$0xff]  ;;  %v439_v51 = vld [vmem:[#allocation7 + $0x2f0] sm:$0xff]  ;;  %v442_v52 = vld [vmem:[#allocation7 + $0x308] sm:$0xff] }
  0x76   : > { %1423 = vmatprep.subr.bf16.mxu0 %v1422_v21  ;;  %337 = vst [vmem:[#allocation2 + $0x8] sm:$0xfe] %v333_v45  ;;  %339 = vst [vmem:[#allocation2 + $0x18] sm:$0x1] %v333_v45  ;;  %v444_v53 = vld [vmem:[#allocation7 + $0x318] sm:$0xff]  ;;  %v1440_v54 = vpack.c.bf16 %v439_v51, %v437_v50  ;;  %v441_v56 = vld [vmem:[#allocation7 + $0x300] sm:$0xff] }
  0x77   : > { %336 = vst [vmem:[#allocation2] sm:$0xfe] %v332_v47  ;;  %338 = vst [vmem:[#allocation2 + $0x10] sm:$0x1] %v332_v47  ;;  %v1442_v55 = vpack.c.bf16 %v444_v53, %v442_v52  ;;  %v443_v57 = vld [vmem:[#allocation7 + $0x310] sm:$0xff]  ;;  %v446_v58 = vld [vmem:[#allocation7 + $0x328] sm:$0xff] }
  0x78   : > { %v448_v59 = vld [vmem:[#allocation7 + $0x338] sm:$0xff]  ;;  %v1444_v62 = vpack.c.bf16 %v443_v57, %v441_v56  ;;  %v445_v2 = vld [vmem:[#allocation7 + $0x320] sm:$0xff]  ;;  %v447_v3 = vld [vmem:[#allocation7 + $0x330] sm:$0xff] }
  0x79   : > { %1425 = vmatpush1.bf16.msra.mxu0 %v1424_v26  ;;  %v1446_v1 = vpack.c.bf16 %v448_v59, %v446_v58  ;;  %v450_v4 = vld [vmem:[#allocation7 + $0x348] sm:$0xff]  ;;  %v452_v5 = vld [vmem:[#allocation7 + $0x358] sm:$0xff]  ;;  %v1448_v7 = vpack.c.bf16 %v447_v3, %v445_v2  ;;  %v449_v9 = vld [vmem:[#allocation7 + $0x340] sm:$0xff] }
  0x7a   : > { %1427 = vmatprep.subr.bf16.mxu0 %v1426_v27  ;;  %v1450_v8 = vpack.c.bf16 %v452_v5, %v450_v4  ;;  %v451_v10 = vld [vmem:[#allocation7 + $0x350] sm:$0xff]  ;;  %v454_v11 = vld [vmem:[#allocation7 + $0x368] sm:$0xff]  ;;  %v456_v12 = vld [vmem:[#allocation7 + $0x378] sm:$0xff] }
  0x7b   : > { %v1452_v13 = vpack.c.bf16 %v451_v10, %v449_v9  ;;  %v1454_v14 = vpack.c.bf16 %v456_v12, %v454_v11  ;;  %v453_v15 = vld [vmem:[#allocation7 + $0x360] sm:$0xff]  ;;  %v455_v16 = vld [vmem:[#allocation7 + $0x370] sm:$0xff]  ;;  %v458_v17 = vld [vmem:[#allocation7 + $0x388] sm:$0xff] }
  0x7c   : > { %v460_v18 = vld [vmem:[#allocation7 + $0x398] sm:$0xff]  ;;  %v1456_v19 = vpack.c.bf16 %v455_v16, %v453_v15  ;;  %v457_v21 = vld [vmem:[#allocation7 + $0x380] sm:$0xff]  ;;  %v459_v22 = vld [vmem:[#allocation7 + $0x390] sm:$0xff] }
  0x7d   : > { %1429 = vmatpush1.bf16.msra.mxu0 %v1428_v32  ;;  %v2266_v60 = vld [vmem:[#allocation2 + $0x8] sm:$0xff]  ;;  %v2268_v61 = vld [vmem:[#allocation2 + $0x18] sm:$0x3]  ;;  %v1458_v20 = vpack.c.bf16 %v460_v18, %v458_v17  ;;  %v1460_v25 = vpack.c.bf16 %v459_v22, %v457_v21  ;;  %v461_v27 = vld [vmem:[#allocation7 + $0x3a0] sm:$0xff] }
  0x7e   : > { %1431 = vmatprep.subr.bf16.mxu0 %v1430_v33  ;;  %v481_v63 = vrot.slane %v2266_v60, 1  ;;  %v482_v0 = vrot.slane %v2268_v61, 1  ;;  %v462_v23 = vld [vmem:[#allocation7 + $0x3a8] sm:$0xff]  ;;  %v464_v24 = vld [vmem:[#allocation7 + $0x3b8] sm:$0xff]  ;;  %v463_v28 = vld [vmem:[#allocation7 + $0x3b0] sm:$0xff]  ;;  %v697_v53 = vrot.slane %v2266_v60, 2 }
  0x7f   : > { %v1462_v26 = vpack.c.bf16 %v464_v24, %v462_v23  ;;  %v466_v29 = vld [vmem:[#allocation7 + $0x3c8] sm:$0xff]  ;;  %v468_v30 = vld [vmem:[#allocation7 + $0x3d8] sm:$0xff]  ;;  %v1464_v31 = vpack.c.bf16 %v463_v28, %v461_v27  ;;  %v465_v33 = vld [vmem:[#allocation7 + $0x3c0] sm:$0xff] }
  0x80   : > { %v483_v6 = vsel %vm477_vm0, %v481_v63, %v482_v0  ;;  %v1466_v32 = vpack.c.bf16 %v468_v30, %v466_v29  ;;  %v467_v34 = vld [vmem:[#allocation7 + $0x3d0] sm:$0xff]  ;;  %v470_v35 = vld [vmem:[#allocation7 + $0x3e8] sm:$0xff]  ;;  %v472_v36 = vld [vmem:[#allocation7 + $0x3f8] sm:$0xff] }
  0x81   : > { %1433 = vmatpush1.bf16.msra.mxu0 %v1432_v38  ;;  %550 = vmatprep.mubr.f32.mxu0 %v483_v6  ;;  %v1468_v37 = vpack.c.bf16 %v467_v34, %v465_v33  ;;  %v469_v38 = vld [vmem:[#allocation7 + $0x3e0] sm:$0xff]  ;;  %v471_v40 = vld [vmem:[#allocation7 + $0x3f0] sm:$0xff]  ;;  %v345_v43 = vld [vmem:[#allocation7 + $0x8] sm:$0xff] }
  0x82   : > { %1435 = vmatprep.subr.bf16.mxu0 %v1434_v39  ;;  %v1470_v39 = vpack.c.bf16 %v472_v36, %v470_v35  ;;  %v2273_v41 = vld [vmem:[#allocation2] sm:$0xff]  ;;  %v2275_v42 = vld [vmem:[#allocation2 + $0x10] sm:$0x3]  ;;  %v347_v44 = vld [vmem:[#allocation7 + $0x18] sm:$0xff]  ;;  %v1472_v45 = vpack.c.bf16 %v471_v40, %v469_v38 }
  0x83   : > { %v478_v46 = vrot.slane %v2273_v41, 1  ;;  %v479_v47 = vrot.slane %v2275_v42, 1  ;;  %v346_v50 = vld [vmem:[#allocation7 + $0x10] sm:$0xff]  ;;  %v349_v51 = vld [vmem:[#allocation7 + $0x28] sm:$0xff]  ;;  %v351_v52 = vld [vmem:[#allocation7 + $0x38] sm:$0xff] }
  0x84   : > { %v1478_v57 = vpack.c.bf16 %v351_v52, %v349_v51  ;;  %v348_v58 = vld [vmem:[#allocation7 + $0x20] sm:$0xff]  ;;  %v350_v59 = vld [vmem:[#allocation7 + $0x30] sm:$0xff]  ;;  %v353_v63 = vld [vmem:[#allocation7 + $0x48] sm:$0xff] }
  0x85   : > { %1437 = vmatpush1.bf16.msra.mxu0 %v1436_v48  ;;  %v1474_v48 = vpack.c.bf16 %v347_v44, %v345_v43  ;;  %v355_v0 = vld [vmem:[#allocation7 + $0x58] sm:$0xff]  ;;  %v354_v2 = vld [vmem:[#allocation7 + $0x50] sm:$0xff]  ;;  %v889_v3 = vld [vmem:[#allocation9 + $0x208] sm:$0xff]  ;;  %v1480_v5 = vpack.c.bf16 %v350_v59, %v348_v58 }
  0x86   : > { %1439 = vmatprep.subr.bf16.mxu0 %v1438_v49  ;;  %v344_v49 = vld [vmem:[#allocation7] sm:$0xff]  ;;  %v891_v4 = vld [vmem:[#allocation9 + $0x218] sm:$0xff]  ;;  %v1482_v10 = vpack.c.bf16 %v355_v0, %v353_v63  ;;  %v897_v15 = vld [vmem:[#allocation9 + $0x248] sm:$0xff] }
  0x87   : > { %v1476_v56 = vpack.c.bf16 %v346_v50, %v344_v49  ;;  %v1602_v6 = vpack.c.bf16 %v891_v4, %v889_v3  ;;  %v895_v9 = vld [vmem:[#allocation9 + $0x238] sm:$0xff]  ;;  %v357_v16 = vld [vmem:[#allocation7 + $0x68] sm:$0xff]  ;;  %v896_v22 = vld [vmem:[#allocation9 + $0x240] sm:$0xff] }
  0x88   : > { %v359_v17 = vld [vmem:[#allocation7 + $0x78] sm:$0xff]  ;;  %v898_v23 = vld [vmem:[#allocation9 + $0x250] sm:$0xff]  ;;  %v361_v28 = vld [vmem:[#allocation7 + $0x88] sm:$0xff] }
  0x89   : > { %1441 = vmatpush1.bf16.msra.mxu0 %v1440_v54  ;;  %v698_v54 = vrot.slane %v2268_v61, 2  ;;  %v888_v61 = vld [vmem:[#allocation9 + $0x200] sm:$0xff]  ;;  %1603 = vmatprep.subr.bf16.mxu1 %v1602_v6  ;;  %v899_v18 = vld [vmem:[#allocation9 + $0x258] sm:$0xff]  ;;  %v1486_v24 = vpack.c.bf16 %v359_v17, %v357_v16  ;;  %v1612_v30 = vpack.c.bf16 %v898_v23, %v896_v22  ;;  %v902_v35 = vld [vmem:[#allocation9 + $0x270] sm:$0xff] }
  0x8a   : > { %1443 = vmatprep.subr.bf16.mxu0 %v1442_v55  ;;  %v480_v55 = vsel %vm477_vm0, %v478_v46, %v479_v47  ;;  %v1610_v21 = vpack.c.bf16 %v899_v18, %v897_v15  ;;  %v903_v27 = vld [vmem:[#allocation9 + $0x278] sm:$0xff]  ;;  %v900_v34 = vld [vmem:[#allocation9 + $0x260] sm:$0xff]  ;;  %v905_v38 = vld [vmem:[#allocation9 + $0x288] sm:$0xff] }
  0x8b   : > { %v363_v29 = vld [vmem:[#allocation7 + $0x98] sm:$0xff]  ;;  %v365_v40 = vld [vmem:[#allocation7 + $0xa8] sm:$0xff]  ;;  %v1616_v44 = vpack.c.bf16 %v902_v35, %v900_v34  ;;  %v364_v46 = vld [vmem:[#allocation7 + $0xa0] sm:$0xff] }
  0x8c   : > { %v1490_v36 = vpack.c.bf16 %v363_v29, %v361_v28  ;;  %v367_v43 = vld [vmem:[#allocation7 + $0xb8] sm:$0xff]  ;;  %v906_v49 = vld [vmem:[#allocation9 + $0x290] sm:$0xff]  ;;  %v909_v52 = vld [vmem:[#allocation9 + $0x2a8] sm:$0xff] }
  0x8d   : > { %1445 = vmatpush1.bf16.msra.mxu0 %v1444_v62  ;;  %v2283_v62 = vsel %vm693_vm1, %v697_v53, %v698_v54  ;;  %v1494_v50 = vpack.c.bf16 %v367_v43, %v365_v40  ;;  %v366_v51 = vld [vmem:[#allocation7 + $0xb0] sm:$0xff]  ;;  %v911_v53 = vld [vmem:[#allocation9 + $0x2b8] sm:$0xff]  ;;  %v369_v54 = vld [vmem:[#allocation7 + $0xc8] sm:$0xff] }
  0x8e   : > { %1447 = vmatprep.subr.bf16.mxu0 %v1446_v1  ;;  %v352_v1 = vld [vmem:[#allocation7 + $0x40] sm:$0xff]  ;;  %v1622_v59 = vpack.c.bf16 %v911_v53, %v909_v52  ;;  %v910_v0 = vld [vmem:[#allocation9 + $0x2b0] sm:$0xff]  ;;  %v913_v3 = vld [vmem:[#allocation9 + $0x2c8] sm:$0xff] }
  0x8f   : > { %v368_v58 = vld [vmem:[#allocation7 + $0xc0] sm:$0xff]  ;;  %v915_v4 = vld [vmem:[#allocation9 + $0x2d8] sm:$0xff]  ;;  %v377_v16 = vld [vmem:[#allocation7 + $0x108] sm:$0xff] }
  0x90   : > { %v908_v63 = vld [vmem:[#allocation9 + $0x2a0] sm:$0xff]  ;;  %v919_v15 = vld [vmem:[#allocation9 + $0x2f8] sm:$0xff]  ;;  %v918_v22 = vld [vmem:[#allocation9 + $0x2f0] sm:$0xff] }
  0x91   : > { %1449 = vmatpush1.bf16.msra.mxu0 %v1448_v7  ;;  %v890_v7 = vld [vmem:[#allocation9 + $0x210] sm:$0xff]  ;;  %v1624_v6 = vpack.c.bf16 %v910_v0, %v908_v63  ;;  %v379_v17 = vld [vmem:[#allocation7 + $0x118] sm:$0xff]  ;;  %v389_v53 = vld [vmem:[#allocation7 + $0x168] sm:$0xff] }
  0x92   : > { %1451 = vmatprep.subr.bf16.mxu0 %v1450_v8  ;;  %v893_v8 = vld [vmem:[#allocation9 + $0x228] sm:$0xff]  ;;  %v1604_v11 = vpack.c.bf16 %v890_v7, %v888_v61  ;;  %v1506_v23 = vpack.c.bf16 %v379_v17, %v377_v16  ;;  %v383_v28 = vld [vmem:[#allocation7 + $0x138] sm:$0xff]  ;;  %v922_v34 = vld [vmem:[#allocation9 + $0x310] sm:$0xff] }
  0x93   : > { %v1606_v12 = vpack.c.bf16 %v895_v9, %v893_v8  ;;  %v373_v61 = vld [vmem:[#allocation7 + $0xe8] sm:$0xff]  ;;  %v372_v8 = vld [vmem:[#allocation7 + $0xe0] sm:$0xff]  ;;  %v1626_v9 = vpack.c.bf16 %v915_v4, %v913_v3  ;;  %v387_v40 = vld [vmem:[#allocation7 + $0x158] sm:$0xff] }
  0x94   : > { %1605 = vmatpush1.bf16.msra.mxu1 %v1604_v11  ;;  %v914_v11 = vld [vmem:[#allocation9 + $0x2d0] sm:$0xff]  ;;  %v931_v52 = vld [vmem:[#allocation9 + $0x358] sm:$0xff]  ;;  %v388_v0 = vld [vmem:[#allocation7 + $0x160] sm:$0xff] }
  0x95   : > { %1453 = vmatpush1.bf16.msra.mxu0 %v1452_v13  ;;  %v892_v13 = vld [vmem:[#allocation9 + $0x220] sm:$0xff]  ;;  %1607 = vmatprep.subr.bf16.mxu1 %v1606_v12  ;;  %v395_v3 = vld [vmem:[#allocation7 + $0x198] sm:$0xff] }
  0x96   : > { %1455 = vmatprep.subr.bf16.mxu0 %v1454_v14  ;;  %v894_v14 = vld [vmem:[#allocation9 + $0x230] sm:$0xff] }
  0x99   : > { %1457 = vmatpush1.bf16.msra.mxu0 %v1456_v19  ;;  %v1608_v19 = vpack.c.bf16 %v894_v14, %v892_v13  ;;  %v374_v13 = vld [vmem:[#allocation7 + $0xf0] sm:$0xff]  ;;  %v917_v14 = vld [vmem:[#allocation9 + $0x2e8] sm:$0xff] }
  0x9a   : > { %1459 = vmatprep.subr.bf16.mxu0 %v1458_v20  ;;  %v1484_v20 = vpack.c.bf16 %v354_v2, %v352_v1  ;;  %v370_v2 = vld [vmem:[#allocation7 + $0xd0] sm:$0xff] }
  0x9b   : > { %1609 = vmatpush1.bf16.msra.mxu1 %v1608_v19  ;;  %v1500_v7 = vpack.c.bf16 %v370_v2, %v368_v58  ;;  %v1504_v19 = vpack.c.bf16 %v374_v13, %v372_v8  ;;  %v928_v58 = vld [vmem:[#allocation9 + $0x340] sm:$0xff]  ;;  %v393_v2 = vld [vmem:[#allocation7 + $0x188] sm:$0xff]  ;;  %v398_v13 = vld [vmem:[#allocation7 + $0x1b0] sm:$0xff] }
  0x9c   : > { %1611 = vmatprep.subr.bf16.mxu1 %v1610_v21  ;;  %v916_v21 = vld [vmem:[#allocation9 + $0x2e0] sm:$0xff]  ;;  %v397_v8 = vld [vmem:[#allocation7 + $0x1a8] sm:$0xff] }
  0x9d   : > { %1461 = vmatpush1.bf16.msra.mxu0 %v1460_v25  ;;  %v358_v25 = vld [vmem:[#allocation7 + $0x70] sm:$0xff]  ;;  %v1632_v29 = vpack.c.bf16 %v918_v22, %v916_v21 }
  0x9e   : > { %1463 = vmatprep.subr.bf16.mxu0 %v1462_v26  ;;  %v901_v26 = vld [vmem:[#allocation9 + $0x268] sm:$0xff] }
  0x9f   : > { %v1614_v33 = vpack.c.bf16 %v903_v27, %v901_v26  ;;  %1613 = vmatpush1.bf16.msra.mxu1 %v1612_v30  ;;  %v923_v26 = vld [vmem:[#allocation9 + $0x318] sm:$0xff]  ;;  %v381_v27 = vld [vmem:[#allocation7 + $0x128] sm:$0xff] }
  0xa0   : > { %v1510_v35 = vpack.c.bf16 %v383_v28, %v381_v27 }
  0xa1   : > { %1465 = vmatpush1.bf16.msra.mxu0 %v1464_v31  ;;  %1615 = vmatprep.subr.bf16.mxu1 %v1614_v33  ;;  %v920_v33 = vld [vmem:[#allocation9 + $0x300] sm:$0xff] }
  0xa2   : > { %1467 = vmatprep.subr.bf16.mxu0 %v1466_v32  ;;  %v360_v32 = vld [vmem:[#allocation7 + $0x80] sm:$0xff]  ;;  %v1636_v43 = vpack.c.bf16 %v922_v34, %v920_v33 }
  0xa3   : > { %1617 = vmatpush1.bf16.msra.mxu1 %v1616_v44 }
  0xa5   : > { %1469 = vmatpush1.bf16.msra.mxu0 %v1468_v37  ;;  %v362_v37 = vld [vmem:[#allocation7 + $0x90] sm:$0xff] }
  0xa6   : > { %1471 = vmatprep.subr.bf16.mxu0 %v1470_v39  ;;  %v907_v39 = vld [vmem:[#allocation9 + $0x298] sm:$0xff] }
  0xa7   : > { %v1618_v47 = vpack.c.bf16 %v907_v39, %v905_v38  ;;  %v927_v38 = vld [vmem:[#allocation9 + $0x338] sm:$0xff]  ;;  %v385_v39 = vld [vmem:[#allocation7 + $0x148] sm:$0xff] }
  0xa9   : > { %1473 = vmatpush1.bf16.msra.mxu0 %v1472_v45  ;;  %v1492_v45 = vpack.c.bf16 %v362_v37, %v360_v32  ;;  %1619 = vmatprep.subr.bf16.mxu1 %v1618_v47  ;;  %v925_v37 = vld [vmem:[#allocation9 + $0x328] sm:$0xff]  ;;  %v924_v47 = vld [vmem:[#allocation9 + $0x320] sm:$0xff] }
  0xaa   : > { %1475 = vmatprep.subr.bf16.mxu0 %v1474_v48  ;;  %v904_v48 = vld [vmem:[#allocation9 + $0x280] sm:$0xff] }
  0xac   : > { %551 = vmatmul.mubr.f32.vlgmr.msra.gmra.mrb[0].mxu0 %v480_v55  ;;  %v371_v55 = vld [vmem:[#allocation7 + $0xd8] sm:$0xff] }
  0xad   : > { %1477 = vmatpush1.bf16.msra.mxu0 %v1476_v56  ;;  %621 = vmatprep.mubr.f32.mxu0 %v2266_v60  ;;  %v356_v60 = vld [vmem:[#allocation7 + $0x60] sm:$0xff]  ;;  %v1620_v56 = vpack.c.bf16 %v906_v49, %v904_v48  ;;  %v1498_v1 = vpack.c.bf16 %v371_v55, %v369_v54  ;;  %v926_v48 = vld [vmem:[#allocation9 + $0x330] sm:$0xff]  ;;  %v1514_v49 = vpack.c.bf16 %v387_v40, %v385_v39  ;;  %v391_v54 = vld [vmem:[#allocation7 + $0x178] sm:$0xff] }
  0xae   : > { %1479 = vmatprep.subr.bf16.mxu0 %v1478_v57  ;;  %v1488_v31 = vpack.c.bf16 %v358_v25, %v356_v60  ;;  %v1496_v57 = vpack.c.bf16 %v366_v51, %v364_v46  ;;  %v1630_v60 = vpack.c.bf16 %v919_v15, %v917_v14  ;;  %v921_v25 = vld [vmem:[#allocation9 + $0x308] sm:$0xff]  ;;  %v1638_v46 = vpack.c.bf16 %v927_v38, %v925_v37  ;;  %v403_v15 = vld [vmem:[#allocation7 + $0x1d8] sm:$0xff] }
  0xaf   : > { %1621 = vmatpush1.bf16.msra.mxu1 %v1620_v56  ;;  %v1634_v32 = vpack.c.bf16 %v923_v26, %v921_v25  ;;  %v929_v51 = vld [vmem:[#allocation9 + $0x348] sm:$0xff]  ;;  %v1640_v55 = vpack.c.bf16 %v926_v48, %v924_v47  ;;  %v1518_v63 = vpack.c.bf16 %v391_v54, %v389_v53  ;;  %v632_v26 = vld [vmem:[#allocation7 + $0x418] sm:$0xff] }
  0xb0   : > { %1623 = vmatprep.subr.bf16.mxu1 %v1622_v59  ;;  %v930_v59 = vld [vmem:[#allocation9 + $0x350] sm:$0xff]  ;;  %v401_v14 = vld [vmem:[#allocation7 + $0x1c8] sm:$0xff]  ;;  %v640_v38 = vld [vmem:[#allocation7 + $0x458] sm:$0xff] }
  0xb1   : > { %1481 = vmatpush1.bf16.msra.mxu0 %v1480_v5  ;;  %v375_v5 = vld [vmem:[#allocation7 + $0xf8] sm:$0xff]  ;;  %v1644_v4 = vpack.c.bf16 %v930_v59, %v928_v58  ;;  %v1530_v17 = vpack.c.bf16 %v403_v15, %v401_v14  ;;  %v630_v25 = vld [vmem:[#allocation7 + $0x408] sm:$0xff] }
  0xb2   : > { %1483 = vmatprep.subr.bf16.mxu0 %v1482_v10  ;;  %v912_v10 = vld [vmem:[#allocation9 + $0x2c0] sm:$0xff]  ;;  %v1502_v12 = vpack.c.bf16 %v375_v5, %v373_v61  ;;  %v1522_v5 = vpack.c.bf16 %v395_v3, %v393_v2  ;;  %v1538_v28 = vpack.c.bf16 %v632_v26, %v630_v25  ;;  %v638_v37 = vld [vmem:[#allocation7 + $0x448] sm:$0xff]  ;;  %v656_v2 = vld [vmem:[#allocation7 + $0x4d8] sm:$0xff] }
  0xb3   : > { %1625 = vmatpush1.bf16.msra.mxu1 %v1624_v6  ;;  %v1628_v18 = vpack.c.bf16 %v914_v11, %v912_v10  ;;  %v392_v6 = vld [vmem:[#allocation7 + $0x180] sm:$0xff]  ;;  %v1546_v40 = vpack.c.bf16 %v640_v38, %v638_v37 }
  0xb4   : > { %1627 = vmatprep.subr.bf16.mxu1 %v1626_v9  ;;  %v399_v9 = vld [vmem:[#allocation7 + $0x1b8] sm:$0xff] }
  0xb5   : > { %1485 = vmatpush1.bf16.msra.mxu0 %v1484_v20  ;;  %v376_v20 = vld [vmem:[#allocation7 + $0x100] sm:$0xff]  ;;  %v1526_v11 = vpack.c.bf16 %v399_v9, %v397_v8 }
  0xb6   : > { %1487 = vmatprep.subr.bf16.mxu0 %v1486_v24  ;;  %v378_v24 = vld [vmem:[#allocation7 + $0x110] sm:$0xff] }
  0xb7   : > { %1629 = vmatpush1.bf16.msra.mxu1 %v1628_v18  ;;  %v1508_v30 = vpack.c.bf16 %v378_v24, %v376_v20  ;;  %v400_v18 = vld [vmem:[#allocation7 + $0x1c0] sm:$0xff]  ;;  %v405_v20 = vld [vmem:[#allocation7 + $0x1e8] sm:$0xff]  ;;  %v406_v24 = vld [vmem:[#allocation7 + $0x1f0] sm:$0xff] }
  0xb8   : > { %1631 = vmatprep.subr.bf16.mxu1 %v1630_v60  ;;  %v407_v60 = vld [vmem:[#allocation7 + $0x1f8] sm:$0xff] }
  0xb9   : > { %1489 = vmatpush1.bf16.msra.mxu0 %v1488_v31  ;;  %v380_v31 = vld [vmem:[#allocation7 + $0x120] sm:$0xff]  ;;  %v1534_v22 = vpack.c.bf16 %v407_v60, %v405_v20 }
  0xba   : > { %1491 = vmatprep.subr.bf16.mxu0 %v1490_v36  ;;  %v382_v36 = vld [vmem:[#allocation7 + $0x130] sm:$0xff] }
  0xbb   : > { %1633 = vmatpush1.bf16.msra.mxu1 %v1632_v29  ;;  %v1512_v44 = vpack.c.bf16 %v382_v36, %v380_v31  ;;  %v629_v29 = vld [vmem:[#allocation7 + $0x400] sm:$0xff]  ;;  %v634_v31 = vld [vmem:[#allocation7 + $0x428] sm:$0xff]  ;;  %v635_v36 = vld [vmem:[#allocation7 + $0x430] sm:$0xff] }
  0xbc   : > { %1635 = vmatprep.subr.bf16.mxu1 %v1634_v32  ;;  %v636_v32 = vld [vmem:[#allocation7 + $0x438] sm:$0xff] }
  0xbd   : > { %1493 = vmatpush1.bf16.msra.mxu0 %v1492_v45  ;;  %v384_v45 = vld [vmem:[#allocation7 + $0x140] sm:$0xff]  ;;  %v1542_v34 = vpack.c.bf16 %v636_v32, %v634_v31 }
  0xbe   : > { %1495 = vmatprep.subr.bf16.mxu0 %v1494_v50  ;;  %v386_v50 = vld [vmem:[#allocation7 + $0x150] sm:$0xff] }
  0xbf   : > { %1637 = vmatpush1.bf16.msra.mxu1 %v1636_v43  ;;  %v1516_v56 = vpack.c.bf16 %v386_v50, %v384_v45  ;;  %v637_v43 = vld [vmem:[#allocation7 + $0x440] sm:$0xff]  ;;  %v642_v45 = vld [vmem:[#allocation7 + $0x468] sm:$0xff]  ;;  %v643_v50 = vld [vmem:[#allocation7 + $0x470] sm:$0xff] }
  0xc0   : > { %1639 = vmatprep.subr.bf16.mxu1 %v1638_v46  ;;  %v644_v46 = vld [vmem:[#allocation7 + $0x478] sm:$0xff] }
  0xc1   : > { %1497 = vmatpush1.bf16.msra.mxu0 %v1496_v57  ;;  %v1642_v57 = vpack.c.bf16 %v931_v52, %v929_v51  ;;  %v1550_v48 = vpack.c.bf16 %v644_v46, %v642_v45  ;;  %v646_v51 = vld [vmem:[#allocation7 + $0x488] sm:$0xff]  ;;  %v648_v52 = vld [vmem:[#allocation7 + $0x498] sm:$0xff] }
  0xc2   : > { %1499 = vmatprep.subr.bf16.mxu0 %v1498_v1  ;;  %v390_v1 = vld [vmem:[#allocation7 + $0x170] sm:$0xff]  ;;  %v1554_v54 = vpack.c.bf16 %v648_v52, %v646_v51 }
  0xc3   : > { %1641 = vmatpush1.bf16.msra.mxu1 %v1640_v55  ;;  %v1520_v61 = vpack.c.bf16 %v390_v1, %v388_v0  ;;  %v645_v55 = vld [vmem:[#allocation7 + $0x480] sm:$0xff]  ;;  %v651_v0 = vld [vmem:[#allocation7 + $0x4b0] sm:$0xff]  ;;  %v654_v1 = vld [vmem:[#allocation7 + $0x4c8] sm:$0xff] }
  0xc4   : > { %1643 = vmatprep.subr.bf16.mxu1 %v1642_v57  ;;  %v652_v57 = vld [vmem:[#allocation7 + $0x4b8] sm:$0xff] }
  0xc5   : > { %1501 = vmatpush1.bf16.msra.mxu0 %v1500_v7  ;;  %v394_v7 = vld [vmem:[#allocation7 + $0x190] sm:$0xff] }
  0xc6   : > { %1503 = vmatprep.subr.bf16.mxu0 %v1502_v12  ;;  %v1524_v10 = vpack.c.bf16 %v394_v7, %v392_v6  ;;  %v396_v12 = vld [vmem:[#allocation7 + $0x1a0] sm:$0xff]  ;;  %v658_v6 = vld [vmem:[#allocation7 + $0x4e8] sm:$0xff]  ;;  %v660_v7 = vld [vmem:[#allocation7 + $0x4f8] sm:$0xff] }
  0xc7   : > { %1645 = vmatpush1.bf16.msra.mxu1 %v1644_v4  ;;  %v1528_v16 = vpack.c.bf16 %v398_v13, %v396_v12  ;;  %v1562_v4 = vpack.c.bf16 %v656_v2, %v654_v1  ;;  %v1566_v9 = vpack.c.bf16 %v660_v7, %v658_v6  ;;  %v662_v12 = vld [vmem:[#allocation7 + $0x508] sm:$0xff]  ;;  %v664_v13 = vld [vmem:[#allocation7 + $0x518] sm:$0xff]  ;;  %v695_v1 = vrot.slane %v2275_v42, 2  ;;  %v934_v6 = vld [vmem:[#allocation9 + $0x370] sm:$0xff] }
  0xc8   : > { %v1570_v15 = vpack.c.bf16 %v664_v13, %v662_v12  ;;  %v941_v42 = vld [vmem:[#allocation9 + $0x3a8] sm:$0xff]  ;;  %v943_v13 = vld [vmem:[#allocation9 + $0x3b8] sm:$0xff] }
  0xc9   : > { %1505 = vmatpush1.bf16.msra.mxu0 %v1504_v19  ;;  %v402_v19 = vld [vmem:[#allocation7 + $0x1d0] sm:$0xff] }
  0xca   : > { %1507 = vmatprep.subr.bf16.mxu0 %v1506_v23  ;;  %v1532_v21 = vpack.c.bf16 %v402_v19, %v400_v18  ;;  %v404_v23 = vld [vmem:[#allocation7 + $0x1e0] sm:$0xff]  ;;  %v666_v18 = vld [vmem:[#allocation7 + $0x528] sm:$0xff]  ;;  %v668_v19 = vld [vmem:[#allocation7 + $0x538] sm:$0xff] }
  0xcb   : > { %v1536_v27 = vpack.c.bf16 %v406_v24, %v404_v23  ;;  %v1574_v60 = vpack.c.bf16 %v668_v19, %v666_v18  ;;  %v670_v23 = vld [vmem:[#allocation7 + $0x548] sm:$0xff]  ;;  %v672_v24 = vld [vmem:[#allocation7 + $0x558] sm:$0xff] }
  0xcc   : > { %v1578_v26 = vpack.c.bf16 %v672_v24, %v670_v23  ;;  %v945_v18 = vld [vmem:[#allocation9 + $0x3c8] sm:$0xff]  ;;  %v947_v19 = vld [vmem:[#allocation9 + $0x3d8] sm:$0xff] }
  0xcd   : > { %1509 = vmatpush1.bf16.msra.mxu0 %v1508_v30  ;;  %v631_v30 = vld [vmem:[#allocation7 + $0x410] sm:$0xff]  ;;  %v951_v23 = vld [vmem:[#allocation9 + $0x3f8] sm:$0xff] }
  0xce   : > { %1511 = vmatprep.subr.bf16.mxu0 %v1510_v35  ;;  %v1540_v33 = vpack.c.bf16 %v631_v30, %v629_v29  ;;  %v633_v35 = vld [vmem:[#allocation7 + $0x420] sm:$0xff]  ;;  %v674_v29 = vld [vmem:[#allocation7 + $0x568] sm:$0xff]  ;;  %v676_v30 = vld [vmem:[#allocation7 + $0x578] sm:$0xff] }
  0xcf   : > { %v1544_v39 = vpack.c.bf16 %v635_v36, %v633_v35  ;;  %v1582_v32 = vpack.c.bf16 %v676_v30, %v674_v29  ;;  %v678_v35 = vld [vmem:[#allocation7 + $0x588] sm:$0xff]  ;;  %v680_v36 = vld [vmem:[#allocation7 + $0x598] sm:$0xff] }
  0xd0   : > { %v1586_v38 = vpack.c.bf16 %v680_v36, %v678_v35  ;;  %v824_v29 = vld [vmem:[#allocation9 + $0x8] sm:$0xff]  ;;  %v826_v30 = vld [vmem:[#allocation9 + $0x18] sm:$0xff]  ;;  %v775_v35 = vld [vmem:[%s2385_s2] sm:$0x3] }
  0xd1   : > { %1513 = vmatpush1.bf16.msra.mxu0 %v1512_v44  ;;  %v639_v44 = vld [vmem:[#allocation7 + $0x450] sm:$0xff] }
  0xd2   : > { %1515 = vmatprep.subr.bf16.mxu0 %v1514_v49  ;;  %v1548_v47 = vpack.c.bf16 %v639_v44, %v637_v43  ;;  %v641_v49 = vld [vmem:[#allocation7 + $0x460] sm:$0xff]  ;;  %v682_v43 = vld [vmem:[#allocation7 + $0x5a8] sm:$0xff]  ;;  %v684_v44 = vld [vmem:[#allocation7 + $0x5b8] sm:$0xff] }
  0xd3   : > { %v1552_v53 = vpack.c.bf16 %v643_v50, %v641_v49  ;;  %v1590_v46 = vpack.c.bf16 %v684_v44, %v682_v43  ;;  %v686_v49 = vld [vmem:[#allocation7 + $0x5c8] sm:$0xff]  ;;  %v688_v50 = vld [vmem:[#allocation7 + $0x5d8] sm:$0xff] }
  0xd4   : > { %v1594_v52 = vpack.c.bf16 %v688_v50, %v686_v49 }
  0xd5   : > { %1517 = vmatpush1.bf16.msra.mxu0 %v1516_v56  ;;  %v650_v56 = vld [vmem:[#allocation7 + $0x4a8] sm:$0xff] }
  0xd6   : > { %1519 = vmatprep.subr.bf16.mxu0 %v1518_v63  ;;  %v1558_v59 = vpack.c.bf16 %v652_v57, %v650_v56  ;;  %v649_v63 = vld [vmem:[#allocation7 + $0x4a0] sm:$0xff] }
  0xd7   : > { %v1560_v3 = vpack.c.bf16 %v651_v0, %v649_v63  ;;  %v694_v0 = vrot.slane %v2273_v41, 2 }
  0xd9   : > { %1521 = vmatpush1.bf16.msra.mxu0 %v1520_v61  ;;  %v653_v61 = vld [vmem:[#allocation7 + $0x4c0] sm:$0xff]  ;;  %v696_v2 = vsel %vm693_vm1, %v694_v0, %v695_v1  ;;  %v830_v1 = vld [vmem:[#allocation9 + $0x38] sm:$0xff] }
  0xda   : > { %1523 = vmatprep.subr.bf16.mxu0 %v1522_v5  ;;  %v655_v5 = vld [vmem:[#allocation7 + $0x4d0] sm:$0xff] }
  0xdb   : > { %v1564_v8 = vpack.c.bf16 %v655_v5, %v653_v61  ;;  %v932_v5 = vld [vmem:[#allocation9 + $0x360] sm:$0xff] }
  0xdc   : > { %v1648_v7 = vpack.c.bf16 %v934_v6, %v932_v5 }
  0xdd   : > { %1525 = vmatpush1.bf16.msra.mxu0 %v1524_v10  ;;  %v657_v10 = vld [vmem:[#allocation7 + $0x4e0] sm:$0xff] }
  0xde   : > { %1527 = vmatprep.subr.bf16.mxu0 %v1526_v11  ;;  %v659_v11 = vld [vmem:[#allocation7 + $0x4f0] sm:$0xff] }
  0xdf   : > { %v1568_v14 = vpack.c.bf16 %v659_v11, %v657_v10  ;;  %v936_v11 = vld [vmem:[#allocation9 + $0x380] sm:$0xff] }
  0xe1   : > { %1529 = vmatpush1.bf16.msra.mxu0 %v1528_v16  ;;  %v661_v16 = vld [vmem:[#allocation7 + $0x500] sm:$0xff] }
  0xe2   : > { %1531 = vmatprep.subr.bf16.mxu0 %v1530_v17  ;;  %v663_v17 = vld [vmem:[#allocation7 + $0x510] sm:$0xff] }
  0xe3   : > { %v1572_v20 = vpack.c.bf16 %v663_v17, %v661_v16  ;;  %v942_v16 = vld [vmem:[#allocation9 + $0x3b0] sm:$0xff] }
  0xe5   : > { %1533 = vmatpush1.bf16.msra.mxu0 %v1532_v21  ;;  %v665_v21 = vld [vmem:[#allocation7 + $0x520] sm:$0xff] }
  0xe6   : > { %1535 = vmatprep.subr.bf16.mxu0 %v1534_v22  ;;  %v667_v22 = vld [vmem:[#allocation7 + $0x530] sm:$0xff] }
  0xe7   : > { %v1576_v25 = vpack.c.bf16 %v667_v22, %v665_v21  ;;  %v946_v21 = vld [vmem:[#allocation9 + $0x3d0] sm:$0xff]  ;;  %v949_v22 = vld [vmem:[#allocation9 + $0x3e8] sm:$0xff] }
  0xe9   : > { %1537 = vmatpush1.bf16.msra.mxu0 %v1536_v27  ;;  %v669_v27 = vld [vmem:[#allocation7 + $0x540] sm:$0xff] }
  0xea   : > { %1539 = vmatprep.subr.bf16.mxu0 %v1538_v28  ;;  %v671_v28 = vld [vmem:[#allocation7 + $0x550] sm:$0xff] }
  0xeb   : > { %v1580_v31 = vpack.c.bf16 %v671_v28, %v669_v27  ;;  %v950_v27 = vld [vmem:[#allocation9 + $0x3f0] sm:$0xff] }
  0xec   : > { %622 = vmatmul.mubr.f32.vlgmr.msra.gmra.mrb[0].mxu0 %v2273_v41  ;;  %v938_v41 = vld [vmem:[#allocation9 + $0x390] sm:$0xff] }
  0xed   : > { %1541 = vmatpush1.bf16.msra.mxu0 %v1540_v33  ;;  %766 = vmatprep.mubr.f32.mxu0 %v2283_v62  ;;  %v647_v62 = vld [vmem:[#allocation7 + $0x490] sm:$0xff]  ;;  %v673_v33 = vld [vmem:[#allocation7 + $0x560] sm:$0xff]  ;;  %v1652_v12 = vpack.c.bf16 %v938_v41, %v936_v11  ;;  %v832_v41 = vld [vmem:[#allocation9 + $0x48] sm:$0xff] }
  0xee   : > { %1543 = vmatprep.subr.bf16.mxu0 %v1542_v34  ;;  %v1556_v58 = vpack.c.bf16 %v647_v62, %v645_v55  ;;  %v675_v34 = vld [vmem:[#allocation7 + $0x570] sm:$0xff]  ;;  %v690_v55 = vld [vmem:[#allocation7 + $0x5e8] sm:$0xff]  ;;  %v692_v62 = vld [vmem:[#allocation7 + $0x5f8] sm:$0xff] }
  0xef   : > { %v1584_v37 = vpack.c.bf16 %v675_v34, %v673_v33  ;;  %v1598_v57 = vpack.c.bf16 %v692_v62, %v690_v55  ;;  %v825_v55 = vld [vmem:[#allocation9 + $0x10] sm:$0xff] }
  0xf1   : > { %1545 = vmatpush1.bf16.msra.mxu0 %v1544_v39  ;;  %v677_v39 = vld [vmem:[#allocation7 + $0x580] sm:$0xff] }
  0xf2   : > { %1547 = vmatprep.subr.bf16.mxu0 %v1546_v40  ;;  %v679_v40 = vld [vmem:[#allocation7 + $0x590] sm:$0xff] }
  0xf3   : > { %v1588_v45 = vpack.c.bf16 %v679_v40, %v677_v39 }
  0xf5   : > { %1549 = vmatpush1.bf16.msra.mxu0 %v1548_v47  ;;  %v681_v47 = vld [vmem:[#allocation7 + $0x5a0] sm:$0xff] }
  0xf6   : > { %1551 = vmatprep.subr.bf16.mxu0 %v1550_v48  ;;  %v683_v48 = vld [vmem:[#allocation7 + $0x5b0] sm:$0xff] }
  0xf7   : > { %v1592_v51 = vpack.c.bf16 %v683_v48, %v681_v47 }
  0xf9   : > { %1553 = vmatpush1.bf16.msra.mxu0 %v1552_v53  ;;  %v685_v53 = vld [vmem:[#allocation7 + $0x5c0] sm:$0xff] }
  0xfa   : > { %1555 = vmatprep.subr.bf16.mxu0 %v1554_v54  ;;  %v687_v54 = vld [vmem:[#allocation7 + $0x5d0] sm:$0xff] }
  0xfb   : > { %v1596_v56 = vpack.c.bf16 %v687_v54, %v685_v53  ;;  %v823_v54 = vld [vmem:[#allocation9] sm:$0xff] }
  0xfc   : > { %v1668_v5 = vpack.c.bf16 %v825_v55, %v823_v54  ;;  %v857_v54 = vld [vmem:[#allocation9 + $0x110] sm:$0xff]  ;;  %v860_v55 = vld [vmem:[#allocation9 + $0x128] sm:$0xff] }
  0xfd   : > { %1557 = vmatpush1.bf16.msra.mxu0 %v1556_v58  ;;  %v689_v58 = vld [vmem:[#allocation7 + $0x5e0] sm:$0xff] }
  0xfe   : > { %1559 = vmatprep.subr.bf16.mxu0 %v1558_v59  ;;  %v691_v59 = vld [vmem:[#allocation7 + $0x5f0] sm:$0xff] }
  0xff   : > { %v1600_v63 = vpack.c.bf16 %v691_v59, %v689_v58 }
 0x101   : > { %1561 = vmatpush1.bf16.msra.mxu0 %v1560_v3  ;;  %v933_v3 = vld [vmem:[#allocation9 + $0x368] sm:$0xff] }
 0x102   : > { %1563 = vmatprep.subr.bf16.mxu0 %v1562_v4  ;;  %v935_v4 = vld [vmem:[#allocation9 + $0x378] sm:$0xff] }
 0x103   : > { %v1646_v61 = vpack.c.bf16 %v935_v4, %v933_v3 }
 0x105   : > { %1565 = vmatpush1.bf16.msra.mxu0 %v1564_v8  ;;  %1647 = vmatprep.subr.bf16.mxu1 %v1646_v61  ;;  %v937_v8 = vld [vmem:[#allocation9 + $0x388] sm:$0xff] }
 0x106   : > { %1567 = vmatprep.subr.bf16.mxu0 %v1566_v9  ;;  %1649 = vmatpush1.bf16.msra.mxu1 %v1648_v7  ;;  %v939_v9 = vld [vmem:[#allocation9 + $0x398] sm:$0xff] }
 0x107   : > { %v1650_v10 = vpack.c.bf16 %v939_v9, %v937_v8  ;;  %v827_v8 = vld [vmem:[#allocation9 + $0x20] sm:$0xff]  ;;  %v829_v9 = vld [vmem:[#allocation9 + $0x30] sm:$0xff] }
 0x109   : > { %1569 = vmatpush1.bf16.msra.mxu0 %v1568_v14  ;;  %1651 = vmatprep.subr.bf16.mxu1 %v1650_v10  ;;  %v1654_v14 = vpack.c.bf16 %v943_v13, %v941_v42  ;;  %v1672_v42 = vpack.c.bf16 %v829_v9, %v827_v8 }
 0x10a   : > { %1571 = vmatprep.subr.bf16.mxu0 %v1570_v15  ;;  %1653 = vmatpush1.bf16.msra.mxu1 %v1652_v12  ;;  %v940_v15 = vld [vmem:[#allocation9 + $0x3a0] sm:$0xff]  ;;  %v834_v12 = vld [vmem:[#allocation9 + $0x58] sm:$0xff] }
 0x10b   : > { %v1656_v17 = vpack.c.bf16 %v942_v16, %v940_v15  ;;  %1655 = vmatprep.subr.bf16.mxu1 %v1654_v14  ;;  %v1674_v13 = vpack.c.bf16 %v834_v12, %v832_v41  ;;  %v831_v14 = vld [vmem:[#allocation9 + $0x40] sm:$0xff]  ;;  %v833_v15 = vld [vmem:[#allocation9 + $0x50] sm:$0xff]  ;;  %v836_v16 = vld [vmem:[#allocation9 + $0x68] sm:$0xff] }
 0x10c   : > { %v869_v41 = vld [vmem:[#allocation9 + $0x170] sm:$0xff]  ;;  %v872_v12 = vld [vmem:[#allocation9 + $0x188] sm:$0xff] }
 0x10d   : > { %1573 = vmatpush1.bf16.msra.mxu0 %v1572_v20  ;;  %v944_v20 = vld [vmem:[#allocation9 + $0x3c0] sm:$0xff] }
 0x10e   : > { %1575 = vmatprep.subr.bf16.mxu0 %v1574_v60  ;;  %1657 = vmatpush1.bf16.msra.mxu1 %v1656_v17  ;;  %v1658_v60 = vpack.c.bf16 %v947_v19, %v945_v18  ;;  %v1660_v24 = vpack.c.bf16 %v946_v21, %v944_v20  ;;  %v838_v17 = vld [vmem:[#allocation9 + $0x78] sm:$0xff]  ;;  %v1676_v18 = vpack.c.bf16 %v833_v15, %v831_v14  ;;  %v835_v20 = vld [vmem:[#allocation9 + $0x60] sm:$0xff]  ;;  %v840_v21 = vld [vmem:[#allocation9 + $0x88] sm:$0xff] }
 0x10f   : > { %v1678_v19 = vpack.c.bf16 %v838_v17, %v836_v16  ;;  %v871_v15 = vld [vmem:[#allocation9 + $0x180] sm:$0xff]  ;;  %v873_v16 = vld [vmem:[#allocation9 + $0x190] sm:$0xff]  ;;  %v876_v17 = vld [vmem:[#allocation9 + $0x1a8] sm:$0xff] }
 0x110   : > { %1659 = vmatprep.subr.bf16.mxu1 %v1658_v60  ;;  %v837_v60 = vld [vmem:[#allocation9 + $0x70] sm:$0xff] }
 0x111   : > { %1577 = vmatpush1.bf16.msra.mxu0 %v1576_v25  ;;  %v1662_v25 = vpack.c.bf16 %v951_v23, %v949_v22  ;;  %v842_v22 = vld [vmem:[#allocation9 + $0x98] sm:$0xff]  ;;  %v1680_v23 = vpack.c.bf16 %v837_v60, %v835_v20  ;;  %v875_v60 = vld [vmem:[#allocation9 + $0x1a0] sm:$0xff] }
 0x112   : > { %1579 = vmatprep.subr.bf16.mxu0 %v1578_v26  ;;  %v948_v26 = vld [vmem:[#allocation9 + $0x3e0] sm:$0xff]  ;;  %1661 = vmatpush1.bf16.msra.mxu1 %v1660_v24  ;;  %v1682_v24 = vpack.c.bf16 %v842_v22, %v840_v21  ;;  %v877_v21 = vld [vmem:[#allocation9 + $0x1b0] sm:$0xff]  ;;  %v880_v22 = vld [vmem:[#allocation9 + $0x1c8] sm:$0xff] }
 0x113   : > { %v1664_v28 = vpack.c.bf16 %v950_v27, %v948_v26  ;;  %1663 = vmatprep.subr.bf16.mxu1 %v1662_v25  ;;  %v839_v25 = vld [vmem:[#allocation9 + $0x80] sm:$0xff]  ;;  %v841_v26 = vld [vmem:[#allocation9 + $0x90] sm:$0xff]  ;;  %v844_v27 = vld [vmem:[#allocation9 + $0xa8] sm:$0xff] }
 0x115   : > { %1581 = vmatpush1.bf16.msra.mxu0 %v1580_v31  ;;  %v1666_v31 = vpack.c.bf16 %v826_v30, %v824_v29  ;;  %v1684_v29 = vpack.c.bf16 %v841_v26, %v839_v25  ;;  %v879_v26 = vld [vmem:[#allocation9 + $0x1c0] sm:$0xff] }
 0x116   : > { %1583 = vmatprep.subr.bf16.mxu0 %v1582_v32  ;;  %1665 = vmatpush1.bf16.msra.mxu1 %v1664_v28  ;;  %v777_v32 = vlaneseq  ;;  %v846_v28 = vld [vmem:[#allocation9 + $0xb8] sm:$0xff] }
 0x117   : > { %1667 = vmatprep.subr.bf16.mxu1 %v1666_v31  ;;  %v1686_v30 = vpack.c.bf16 %v846_v28, %v844_v27  ;;  %v843_v31 = vld [vmem:[#allocation9 + $0xa0] sm:$0xff]  ;;  %v881_v27 = vld [vmem:[#allocation9 + $0x1d0] sm:$0xff]  ;;  %v884_v28 = vld [vmem:[#allocation9 + $0x1e8] sm:$0xff] }
 0x118   : > { %v778_v33 = vshrl.u32 %v777_v32, 7  ;;  %v845_v32 = vld [vmem:[#allocation9 + $0xb0] sm:$0xff] }
 0x119   : > { %1585 = vmatpush1.bf16.msra.mxu0 %v1584_v37  ;;  %v789_v37 = vld [vmem:[%s2386_s3] sm:$0x3] }
 0x11a   : > { %1587 = vmatprep.subr.bf16.mxu0 %v1586_v38  ;;  %v2291_v34 = vsub.s32 0, %v778_v33  ;;  %v2296_v36 = vsub.s32 1, %v778_v33  ;;  %v848_v33 = vld [vmem:[#allocation9 + $0xc8] sm:$0xff] }
 0x11c   : > { %v780_v38 = vrot.slane %v775_v35, %v2291_v34  ;;  %v784_v39 = vrot.slane %v775_v35, %v2296_v36  ;;  %v794_v40 = vrot.slane %v789_v37, %v2291_v34  ;;  %v798_v44 = vrot.slane %v789_v37, %v2296_v36  ;;  %v850_v35 = vld [vmem:[#allocation9 + $0xd8] sm:$0xff] }
 0x11d   : > { %1589 = vmatpush1.bf16.msra.mxu0 %v1588_v45  ;;  %v1688_v37 = vpack.c.bf16 %v845_v32, %v843_v31  ;;  %v883_v32 = vld [vmem:[#allocation9 + $0x1e0] sm:$0xff] }
 0x11e   : > { %1591 = vmatprep.subr.bf16.mxu0 %v1590_v46 }
 0x121   : > { %1593 = vmatpush1.bf16.msra.mxu0 %v1592_v51 }
 0x122   : > { %1595 = vmatprep.subr.bf16.mxu0 %v1594_v52 }
 0x125   : > { %1597 = vmatpush1.bf16.msra.mxu0 %v1596_v56 }
 0x126   : > { %1599 = vmatprep.subr.bf16.mxu0 %v1598_v57  ;;  %v828_v57 = vld [vmem:[#allocation9 + $0x28] sm:$0xff] }
 0x127   : > { %v1670_v7 = vpack.c.bf16 %v830_v1, %v828_v57  ;;  %v862_v57 = vld [vmem:[#allocation9 + $0x138] sm:$0xff]  ;;  %v864_v1 = vld [vmem:[#allocation9 + $0x148] sm:$0xff] }
 0x129   : > { %1601 = vmatpush1.bf16.msra.mxu0 %v1600_v63 }
 0x12c   : > { %767 = vmatmul.mubr.f32.vlgmr.msra.gmra.mrb[0].mxu0 %v696_v2 }
 0x1ff   : > { %v768_v43 = vpop.f32.mrb[0].mxu0 }
 0x200   : > { %v787_v45 = vmul.f32 %v780_v38, %v768_v43  ;;  %v770_v46 = vpop.f32.mrb[1].mxu0  ;;  %v1690_v38 = vpack.c.bf16 %v850_v35, %v848_v33  ;;  %v852_v43 = vld [vmem:[#allocation9 + $0xe8] sm:$0xff]  ;;  %v885_v33 = vld [vmem:[#allocation9 + $0x1f0] sm:$0xff] }
 0x201   : > { %v788_v47 = vmul.f32 %v784_v39, %v770_v46  ;;  %v847_v39 = vld [vmem:[#allocation9 + $0xc0] sm:$0xff]  ;;  %v1108_v35 = vld [vmem:[#allocation9 + $0x408] sm:$0xff] }
 0x202   : > { %v801_v48 = vadd.f32 %v794_v40, %v787_v45  ;;  %v849_v40 = vld [vmem:[#allocation9 + $0xd0] sm:$0xff] }
 0x203   : > { %v802_v49 = vadd.f32 %v798_v44, %v788_v47  ;;  %v854_v44 = vld [vmem:[#allocation9 + $0xf8] sm:$0xff]  ;;  %v1692_v45 = vpack.c.bf16 %v849_v40, %v847_v39  ;;  %v851_v47 = vld [vmem:[#allocation9 + $0xe0] sm:$0xff] }
 0x204   : > { %v803_v50 = vmax.f32 %v801_v48, 0.0  ;;  %v1694_v46 = vpack.c.bf16 %v854_v44, %v852_v43  ;;  %v853_v48 = vld [vmem:[#allocation9 + $0xf0] sm:$0xff]  ;;  %v1107_v40 = vld [vmem:[#allocation9 + $0x400] sm:$0xff]  ;;  %v1112_v44 = vld [vmem:[#allocation9 + $0x428] sm:$0xff] }
 0x205   : > { %v804_v51 = vmax.f32 %v802_v49, 0.0  ;;  %v856_v49 = vld [vmem:[#allocation9 + $0x108] sm:$0xff]  ;;  %v1109_v43 = vld [vmem:[#allocation9 + $0x410] sm:$0xff] }
 0x206   : > { %v811_v52 = vrot.slane %v803_v50, 7  ;;  %v858_v50 = vld [vmem:[#allocation9 + $0x118] sm:$0xff] }
 0x207   : > { %v812_v53 = vrot.slane %v804_v51, 7  ;;  %v1696_v51 = vpack.c.bf16 %v853_v48, %v851_v47  ;;  %v1111_v48 = vld [vmem:[#allocation9 + $0x420] sm:$0xff] }
 0x208   : > { %815 = vst [vmem:[#allocation3] sm:$0xfe] %v811_v52  ;;  %817 = vst [vmem:[#allocation3 + $0x10] sm:$0x1] %v811_v52  ;;  %v1698_v52 = vpack.c.bf16 %v858_v50, %v856_v49  ;;  %v1113_v49 = vld [vmem:[#allocation9 + $0x430] sm:$0xff]  ;;  %v1116_v50 = vld [vmem:[#allocation9 + $0x448] sm:$0xff] }
 0x209   : > { %816 = vst [vmem:[#allocation3 + $0x8] sm:$0xfe] %v812_v53  ;;  %818 = vst [vmem:[#allocation3 + $0x18] sm:$0x1] %v812_v53  ;;  %v855_v53 = vld [vmem:[#allocation9 + $0x100] sm:$0xff] }
 0x20f   : > { %v2305_v62 = vld [vmem:[#allocation3] sm:$0xff]  ;;  %v2307_v56 = vld [vmem:[#allocation3 + $0x10] sm:$0x3] }
 0x210   : > { %v820_v58 = vld [vmem:[#allocation3 + $0x8] sm:$0xff]  ;;  %v822_v59 = vld [vmem:[#allocation3 + $0x18] sm:$0x3]  ;;  %v956_v63 = vrot.slane %v2305_v62, 1  ;;  %v957_v0 = vrot.slane %v2307_v56, 1 }
 0x211   : > { %v959_v2 = vrot.slane %v820_v58, 1  ;;  %v960_v3 = vrot.slane %v822_v59, 1  ;;  %v1174_v4 = vrot.slane %v820_v58, 2  ;;  %v1175_v61 = vrot.slane %v822_v59, 2 }
 0x212   : > { %v958_v11 = vsel %vm477_vm0, %v956_v63, %v957_v0  ;;  %v1702_v59 = vpack.c.bf16 %v862_v57, %v860_v55  ;;  %v859_v63 = vld [vmem:[#allocation9 + $0x120] sm:$0xff]  ;;  %v861_v0 = vld [vmem:[#allocation9 + $0x130] sm:$0xff]  ;;  %v1120_v57 = vld [vmem:[#allocation9 + $0x468] sm:$0xff] }
 0x213   : > { %v961_v6 = vsel %vm477_vm0, %v959_v2, %v960_v3  ;;  %v2313_v10 = vsel %vm693_vm1, %v1174_v4, %v1175_v61  ;;  %v866_v2 = vld [vmem:[#allocation9 + $0x158] sm:$0xff]  ;;  %v1704_v3 = vpack.c.bf16 %v861_v0, %v859_v63  ;;  %v863_v61 = vld [vmem:[#allocation9 + $0x140] sm:$0xff]  ;;  %v1117_v55 = vld [vmem:[#allocation9 + $0x450] sm:$0xff] }
 0x214   : > { %1028 = vmatprep.mubr.f32.mxu1 %v961_v6  ;;  %v1706_v4 = vpack.c.bf16 %v866_v2, %v864_v1  ;;  %v868_v6 = vld [vmem:[#allocation9 + $0x168] sm:$0xff]  ;;  %v1119_v0 = vld [vmem:[#allocation9 + $0x460] sm:$0xff]  ;;  %v1121_v1 = vld [vmem:[#allocation9 + $0x470] sm:$0xff] }
 0x215   : > { %1029 = vmatmul.mubr.f32.vlgmr.msra.gmra.mrb[0].mxu1 %v958_v11  ;;  %v867_v11 = vld [vmem:[#allocation9 + $0x160] sm:$0xff]  ;;  %v1124_v2 = vld [vmem:[#allocation9 + $0x488] sm:$0xff] }
 0x216   : > { %1669 = vmatpush1.bf16.msra.mxu1 %v1668_v5  ;;  %1099 = vmatprep.mubr.f32.mxu1 %v820_v58  ;;  %v1700_v58 = vpack.c.bf16 %v857_v54, %v855_v53  ;;  %v865_v5 = vld [vmem:[#allocation9 + $0x150] sm:$0xff]  ;;  %v1115_v54 = vld [vmem:[#allocation9 + $0x440] sm:$0xff] }
 0x217   : > { %1671 = vmatprep.subr.bf16.mxu1 %v1670_v7  ;;  %v870_v7 = vld [vmem:[#allocation9 + $0x178] sm:$0xff]  ;;  %v1708_v8 = vpack.c.bf16 %v865_v5, %v863_v61  ;;  %v1125_v5 = vld [vmem:[#allocation9 + $0x490] sm:$0xff] }
 0x218   : > { %v1710_v9 = vpack.c.bf16 %v870_v7, %v868_v6  ;;  %v1128_v6 = vld [vmem:[#allocation9 + $0x4a8] sm:$0xff]  ;;  %v1130_v7 = vld [vmem:[#allocation9 + $0x4b8] sm:$0xff] }
 0x21a   : > { %1673 = vmatpush1.bf16.msra.mxu1 %v1672_v42  ;;  %v874_v42 = vld [vmem:[#allocation9 + $0x198] sm:$0xff] }
 0x21b   : > { %1675 = vmatprep.subr.bf16.mxu1 %v1674_v13  ;;  %v1712_v13 = vpack.c.bf16 %v869_v41, %v867_v11  ;;  %v1714_v14 = vpack.c.bf16 %v874_v42, %v872_v12  ;;  %v1127_v11 = vld [vmem:[#allocation9 + $0x4a0] sm:$0xff]  ;;  %v1129_v41 = vld [vmem:[#allocation9 + $0x4b0] sm:$0xff]  ;;  %v1132_v12 = vld [vmem:[#allocation9 + $0x4c8] sm:$0xff] }
 0x21c   : > { %v1134_v42 = vld [vmem:[#allocation9 + $0x4d8] sm:$0xff] }
 0x21e   : > { %1677 = vmatpush1.bf16.msra.mxu1 %v1676_v18  ;;  %v878_v18 = vld [vmem:[#allocation9 + $0x1b8] sm:$0xff] }
 0x21f   : > { %1679 = vmatprep.subr.bf16.mxu1 %v1678_v19  ;;  %v1716_v19 = vpack.c.bf16 %v873_v16, %v871_v15  ;;  %v1718_v20 = vpack.c.bf16 %v878_v18, %v876_v17  ;;  %v1131_v15 = vld [vmem:[#allocation9 + $0x4c0] sm:$0xff]  ;;  %v1133_v16 = vld [vmem:[#allocation9 + $0x4d0] sm:$0xff]  ;;  %v1136_v17 = vld [vmem:[#allocation9 + $0x4e8] sm:$0xff] }
 0x220   : > { %v1138_v18 = vld [vmem:[#allocation9 + $0x4f8] sm:$0xff] }
 0x222   : > { %1681 = vmatpush1.bf16.msra.mxu1 %v1680_v23  ;;  %v882_v23 = vld [vmem:[#allocation9 + $0x1d8] sm:$0xff] }
 0x223   : > { %1683 = vmatprep.subr.bf16.mxu1 %v1682_v24  ;;  %v1720_v24 = vpack.c.bf16 %v877_v21, %v875_v60  ;;  %v1722_v25 = vpack.c.bf16 %v882_v23, %v880_v22  ;;  %v1135_v60 = vld [vmem:[#allocation9 + $0x4e0] sm:$0xff]  ;;  %v1137_v21 = vld [vmem:[#allocation9 + $0x4f0] sm:$0xff]  ;;  %v1140_v22 = vld [vmem:[#allocation9 + $0x508] sm:$0xff] }
 0x224   : > { %v1142_v23 = vld [vmem:[#allocation9 + $0x518] sm:$0xff] }
 0x226   : > { %1685 = vmatpush1.bf16.msra.mxu1 %v1684_v29  ;;  %v886_v29 = vld [vmem:[#allocation9 + $0x1f8] sm:$0xff] }
 0x227   : > { %1687 = vmatprep.subr.bf16.mxu1 %v1686_v30  ;;  %v1724_v30 = vpack.c.bf16 %v881_v27, %v879_v26  ;;  %v1726_v31 = vpack.c.bf16 %v886_v29, %v884_v28  ;;  %v1139_v26 = vld [vmem:[#allocation9 + $0x500] sm:$0xff]  ;;  %v1141_v27 = vld [vmem:[#allocation9 + $0x510] sm:$0xff]  ;;  %v1144_v28 = vld [vmem:[#allocation9 + $0x528] sm:$0xff] }
 0x228   : > { %v1146_v29 = vld [vmem:[#allocation9 + $0x538] sm:$0xff] }
 0x22a   : > { %1689 = vmatpush1.bf16.msra.mxu1 %v1688_v37  ;;  %v1110_v37 = vld [vmem:[#allocation9 + $0x418] sm:$0xff] }
 0x22b   : > { %1691 = vmatprep.subr.bf16.mxu1 %v1690_v38  ;;  %v1728_v38 = vpack.c.bf16 %v885_v33, %v883_v32  ;;  %v1730_v39 = vpack.c.bf16 %v1110_v37, %v1108_v35  ;;  %v1143_v32 = vld [vmem:[#allocation9 + $0x520] sm:$0xff]  ;;  %v1145_v33 = vld [vmem:[#allocation9 + $0x530] sm:$0xff]  ;;  %v1148_v35 = vld [vmem:[#allocation9 + $0x548] sm:$0xff] }
 0x22c   : > { %v1150_v37 = vld [vmem:[#allocation9 + $0x558] sm:$0xff] }
 0x22e   : > { %1693 = vmatpush1.bf16.msra.mxu1 %v1692_v45  ;;  %v1114_v45 = vld [vmem:[#allocation9 + $0x438] sm:$0xff] }
 0x22f   : > { %1695 = vmatprep.subr.bf16.mxu1 %v1694_v46  ;;  %v1732_v46 = vpack.c.bf16 %v1109_v43, %v1107_v40  ;;  %v1734_v47 = vpack.c.bf16 %v1114_v45, %v1112_v44  ;;  %v1147_v40 = vld [vmem:[#allocation9 + $0x540] sm:$0xff]  ;;  %v1149_v43 = vld [vmem:[#allocation9 + $0x550] sm:$0xff]  ;;  %v1152_v44 = vld [vmem:[#allocation9 + $0x568] sm:$0xff] }
 0x230   : > { %v1154_v45 = vld [vmem:[#allocation9 + $0x578] sm:$0xff] }
 0x232   : > { %1697 = vmatpush1.bf16.msra.mxu1 %v1696_v51  ;;  %v1118_v51 = vld [vmem:[#allocation9 + $0x458] sm:$0xff] }
 0x233   : > { %1699 = vmatprep.subr.bf16.mxu1 %v1698_v52  ;;  %v1736_v52 = vpack.c.bf16 %v1113_v49, %v1111_v48  ;;  %v1738_v53 = vpack.c.bf16 %v1118_v51, %v1116_v50  ;;  %v1151_v48 = vld [vmem:[#allocation9 + $0x560] sm:$0xff]  ;;  %v1153_v49 = vld [vmem:[#allocation9 + $0x570] sm:$0xff]  ;;  %v1156_v50 = vld [vmem:[#allocation9 + $0x588] sm:$0xff] }
 0x234   : > { %v1158_v51 = vld [vmem:[#allocation9 + $0x598] sm:$0xff] }
 0x236   : > { %1701 = vmatpush1.bf16.msra.mxu1 %v1700_v58  ;;  %v1122_v58 = vld [vmem:[#allocation9 + $0x478] sm:$0xff] }
 0x237   : > { %1703 = vmatprep.subr.bf16.mxu1 %v1702_v59  ;;  %v1740_v59 = vpack.c.bf16 %v1117_v55, %v1115_v54  ;;  %v1742_v63 = vpack.c.bf16 %v1122_v58, %v1120_v57  ;;  %v1155_v54 = vld [vmem:[#allocation9 + $0x580] sm:$0xff]  ;;  %v1157_v55 = vld [vmem:[#allocation9 + $0x590] sm:$0xff]  ;;  %v1160_v57 = vld [vmem:[#allocation9 + $0x5a8] sm:$0xff] }
 0x238   : > { %v1162_v58 = vld [vmem:[#allocation9 + $0x5b8] sm:$0xff] }
 0x23a   : > { %1705 = vmatpush1.bf16.msra.mxu1 %v1704_v3  ;;  %v1126_v3 = vld [vmem:[#allocation9 + $0x498] sm:$0xff] }
 0x23b   : > { %1707 = vmatprep.subr.bf16.mxu1 %v1706_v4  ;;  %v1744_v4 = vpack.c.bf16 %v1121_v1, %v1119_v0  ;;  %v1746_v61 = vpack.c.bf16 %v1126_v3, %v1124_v2  ;;  %v1159_v0 = vld [vmem:[#allocation9 + $0x5a0] sm:$0xff]  ;;  %v1161_v1 = vld [vmem:[#allocation9 + $0x5b0] sm:$0xff]  ;;  %v1164_v2 = vld [vmem:[#allocation9 + $0x5c8] sm:$0xff] }
 0x23c   : > { %v1166_v3 = vld [vmem:[#allocation9 + $0x5d8] sm:$0xff] }
 0x23e   : > { %1709 = vmatpush1.bf16.msra.mxu1 %v1708_v8 }
 0x23f   : > { %1711 = vmatprep.subr.bf16.mxu1 %v1710_v9  ;;  %v1750_v9 = vpack.c.bf16 %v1130_v7, %v1128_v6  ;;  %v1168_v6 = vld [vmem:[#allocation9 + $0x5e8] sm:$0xff]  ;;  %v1170_v7 = vld [vmem:[#allocation9 + $0x5f8] sm:$0xff] }
 0x242   : > { %1713 = vmatpush1.bf16.msra.mxu1 %v1712_v13  ;;  %v1752_v13 = vpack.c.bf16 %v1129_v41, %v1127_v11  ;;  %v1167_v11 = vld [vmem:[#allocation9 + $0x5e0] sm:$0xff]  ;;  %v1169_v41 = vld [vmem:[#allocation9 + $0x5f0] sm:$0xff] }
 0x243   : > { %1715 = vmatprep.subr.bf16.mxu1 %v1714_v14  ;;  %v1754_v14 = vpack.c.bf16 %v1134_v42, %v1132_v12  ;;  %v1792_v12 = vpack.c.bf16 %v1169_v41, %v1167_v11  ;;  %v1171_v42 = vrot.slane %v2305_v62, 2 }
 0x246   : > { %1717 = vmatpush1.bf16.msra.mxu1 %v1716_v19  ;;  %v1756_v19 = vpack.c.bf16 %v1133_v16, %v1131_v15  ;;  %v1252_v15 = vld [vmem:[%s2388_s5] sm:$0x3] }
 0x247   : > { %1719 = vmatprep.subr.bf16.mxu1 %v1718_v20  ;;  %v1758_v20 = vpack.c.bf16 %v1138_v18, %v1136_v17  ;;  %v1266_v16 = vld [vmem:[%s2389_s6] sm:$0x3] }
 0x248   : > { %v1271_v17 = vrot.slane %v1266_v16, %v2291_v34 }
 0x24a   : > { %1721 = vmatpush1.bf16.msra.mxu1 %v1720_v24  ;;  %v1760_v24 = vpack.c.bf16 %v1137_v21, %v1135_v60 }
 0x24b   : > { %1723 = vmatprep.subr.bf16.mxu1 %v1722_v25  ;;  %v1762_v25 = vpack.c.bf16 %v1142_v23, %v1140_v22 }
 0x24e   : > { %1725 = vmatpush1.bf16.msra.mxu1 %v1724_v30  ;;  %v1764_v30 = vpack.c.bf16 %v1141_v27, %v1139_v26  ;;  %v1873_v26 = vld [vmem:[%s2254_s29 + $0x8] sm:$0xff] }
 0x24f   : > { %1727 = vmatprep.subr.bf16.mxu1 %v1726_v31  ;;  %v1766_v31 = vpack.c.bf16 %v1146_v29, %v1144_v28 }
 0x252   : > { %1729 = vmatpush1.bf16.msra.mxu1 %v1728_v38  ;;  %v1768_v38 = vpack.c.bf16 %v1145_v33, %v1143_v32 }
 0x253   : > { %1731 = vmatprep.subr.bf16.mxu1 %v1730_v39  ;;  %v1770_v39 = vpack.c.bf16 %v1150_v37, %v1148_v35 }
 0x255   : > { %1100 = vmatmul.mubr.f32.vlgmr.msra.gmra.mrb[0].mxu1 %v2305_v62  ;;  %v1257_v62 = vrot.slane %v1252_v15, %v2291_v34 }
 0x256   : > { %1733 = vmatpush1.bf16.msra.mxu1 %v1732_v46  ;;  %1243 = vmatprep.mubr.f32.mxu1 %v2313_v10  ;;  %v1123_v10 = vld [vmem:[#allocation9 + $0x480] sm:$0xff]  ;;  %v1772_v46 = vpack.c.bf16 %v1149_v43, %v1147_v40 }
 0x257   : > { %1735 = vmatprep.subr.bf16.mxu1 %v1734_v47  ;;  %v1748_v8 = vpack.c.bf16 %v1125_v5, %v1123_v10  ;;  %v1774_v47 = vpack.c.bf16 %v1154_v45, %v1152_v44  ;;  %v1163_v10 = vld [vmem:[#allocation9 + $0x5c0] sm:$0xff]  ;;  %v1165_v5 = vld [vmem:[#allocation9 + $0x5d0] sm:$0xff] }
 0x25a   : > { %1737 = vmatpush1.bf16.msra.mxu1 %v1736_v52  ;;  %v1776_v52 = vpack.c.bf16 %v1153_v49, %v1151_v48 }
 0x25b   : > { %1739 = vmatprep.subr.bf16.mxu1 %v1738_v53  ;;  %v1778_v53 = vpack.c.bf16 %v1158_v51, %v1156_v50 }
 0x25e   : > { %1741 = vmatpush1.bf16.msra.mxu1 %v1740_v59  ;;  %v1780_v59 = vpack.c.bf16 %v1157_v55, %v1155_v54 }
 0x25f   : > { %1743 = vmatprep.subr.bf16.mxu1 %v1742_v63  ;;  %v1782_v63 = vpack.c.bf16 %v1162_v58, %v1160_v57 }
 0x262   : > { %1745 = vmatpush1.bf16.msra.mxu1 %v1744_v4  ;;  %v1784_v4 = vpack.c.bf16 %v1161_v1, %v1159_v0 }
 0x263   : > { %1747 = vmatprep.subr.bf16.mxu1 %v1746_v61  ;;  %v1786_v61 = vpack.c.bf16 %v1166_v3, %v1164_v2 }
 0x266   : > { %1749 = vmatpush1.bf16.msra.mxu1 %v1748_v8  ;;  %v1788_v8 = vpack.c.bf16 %v1165_v5, %v1163_v10 }
 0x267   : > { %1751 = vmatprep.subr.bf16.mxu1 %v1750_v9  ;;  %v1790_v9 = vpack.c.bf16 %v1170_v7, %v1168_v6 }
 0x26a   : > { %1753 = vmatpush1.bf16.msra.mxu1 %v1752_v13  ;;  %v1172_v13 = vrot.slane %v2307_v56, 2  ;;  %v1261_v56 = vrot.slane %v1252_v15, %v2296_v36 }
 0x26b   : > { %1755 = vmatprep.subr.bf16.mxu1 %v1754_v14 }
 0x26c   : > { %v1173_v14 = vsel %vm693_vm1, %v1171_v42, %v1172_v13 }
 0x26e   : > { %1757 = vmatpush1.bf16.msra.mxu1 %v1756_v19  ;;  %v1275_v19 = vrot.slane %v1266_v16, %v2296_v36 }
 0x26f   : > { %1759 = vmatprep.subr.bf16.mxu1 %v1758_v20 }
 0x272   : > { %1761 = vmatpush1.bf16.msra.mxu1 %v1760_v24  ;;  %v1872_v24 = vld [vmem:[%s2254_s29] sm:$0xff]  ;;  %s1964_s29 = sshll.u32 %s2038_s14, 4  ;;  %s1965_s29 = int_to_ptr.vmem [resolvable:$false] %s1964_s29 }
 0x273   : > { %1763 = vmatprep.subr.bf16.mxu1 %v1762_v25  ;;  %s1966_s22 = scalar_lea.vmem %s1965_s29, 512  ;;  %p1967_p7 = scmp.lt.s32.totalorder %s2341_s23, %s1965_s29 }
 0x274   : > { %p1968_p9 = scmp.lt.s32.totalorder %s1966_s22, %s1960_s11 }
 0x276   : > { %1765 = vmatpush1.bf16.msra.mxu1 %v1764_v30  ;;  %p1969_p12 = por %p1968_p9, %p1967_p7 }
 0x277   : > { %1767 = vmatprep.subr.bf16.mxu1 %v1766_v31 }
 0x278   : > { %p1970_p2 = pnand %p1969_p12, %p1963_p3 }
 0x27a   : > { %1769 = vmatpush1.bf16.msra.mxu1 %v1768_v38 }
 0x27b   : > { %1771 = vmatprep.subr.bf16.mxu1 %v1770_v39 }
 0x27e   : > { %1773 = vmatpush1.bf16.msra.mxu1 %v1772_v46 }
 0x27f   : > { %1775 = vmatprep.subr.bf16.mxu1 %v1774_v47 }
 0x282   : > { %1777 = vmatpush1.bf16.msra.mxu1 %v1776_v52 }
 0x283   : > { %1779 = vmatprep.subr.bf16.mxu1 %v1778_v53 }
 0x286   : > { %1781 = vmatpush1.bf16.msra.mxu1 %v1780_v59 }
 0x287   : > { %1783 = vmatprep.subr.bf16.mxu1 %v1782_v63 }
 0x28a   : > { %1785 = vmatpush1.bf16.msra.mxu1 %v1784_v4 }
 0x28b   : > { %1787 = vmatprep.subr.bf16.mxu1 %v1786_v61 }
 0x28e   : > { %1789 = vmatpush1.bf16.msra.mxu1 %v1788_v8 }
 0x28f   : > { %1791 = vmatprep.subr.bf16.mxu1 %v1790_v9 }
 0x292   : > { %1793 = vmatpush1.bf16.msra.mxu1 %v1792_v12 }
 0x295   : > { %1244 = vmatmul.mubr.f32.vlgmr.msra.gmra.mrb[0].mxu1 %v1173_v14 }
 0x368   : > { %v1245_v18 = vpop.f32.mrb[0].mxu1 }
 0x369   : > { %v1264_v20 = vmul.f32 %v1257_v62, %v1245_v18  ;;  %v1247_v60 = vpop.f32.mrb[1].mxu1 }
 0x36a   : > { %v1265_v21 = vmul.f32 %v1261_v56, %v1247_v60 }
 0x36b   : > { %v1278_v22 = vadd.f32 %v1271_v17, %v1264_v20 }
 0x36c   : > { %v1279_v23 = vadd.f32 %v1275_v19, %v1265_v21 }
 0x36d   : > { %v1280_v25 = vadd.f32 %v1872_v24, %v1278_v22 }
 0x36e   : > { %v1281_v27 = vadd.f32 %v1873_v26, %v1279_v23 }
 0x36f   : > { %v1282_v28 = vmax.f32 %v1280_v25, 0.0 }
 0x370   : > { %v1283_v34 = vmax.f32 %v1281_v27, 0.0 }
 0x371   : > { %1284 = vst [vmem:[%s323_s19] sm:$0xff] %v1282_v28 }
 0x372   : > { %1285 = vst [vmem:[%s323_s19 + $0x8] sm:$0xff] %v1283_v34 }
 0x373   : > { %1973 = shalt.err (!%p1970_p2)
}
 0x374   : > { %s1974_s12 = scalar_lea.hbm %s2339_s20, 256  ;;  %s1978_s21 = scalar_lea.hbm %s2390_s7, 512 }
 0x375   : > { %p1975_p13 = scmp.ne.s32.totalorder %s2339_s20, %s1974_s12  ;;  %p1979_p4 = scmp.lt.u32.totalorder %s2339_s20, %s2390_s7 }
 0x376   : > { %p1980_p5 = scmp.lt.u32.totalorder %s1978_s21, %s1974_s12  ;;  %p1982_p11 = scmp.lt.u32.totalorder %s1974_s12, %s2339_s20 }
 0x377   : > { %p1976_p6 = pnand %p1975_p13, %p2404_p0 }
 0x378   : > { %p1981_p8 = por %p1980_p5, %p1979_p4 }
 0x379   : > { %p1977_p10 = pneg %p1976_p6 }
 0x37a   : > { %p1983_p1 = por %p1982_p11, %p1981_p8 }
 0x37c   : > { %p1984_p3 = pnand %p1983_p1, %p1977_p10 }
 0x37e   : > { %1987 = shalt.err (!%p1984_p3)
}
 0x37f   : > { %1812 = dma.vmem_to_hbm [thread:$0]  (%p2404_p0), %s2341_s23, 256, %s2339_s20, %s1287_s28  }
 0x380 PF: > { %s1313_s30 = sand.u32 1, %s2018_s24   ;;  %p2405_p7 = scmp.ne.s32.totalorder %s2395_s8, 0 }
 0x381   : > { %p2406_p9 = scmp.ge.s32.totalorder %s2030_s27, 2  ;;  %s1314_s9 = scalar_lea.sflag [#allocation6], %s1313_s30 }
 0x383   : > { %p1826_p12 = pnand %p2406_p9, %p2405_p7 }
 0x385   : > { %2013 = dma.done.wait (!%p1826_p12), %s1314_s9, 256  }
 0x386   : > { %2015 = vsyncadd (!%p1826_p12), %s1314_s9, 4294967040  ;;  %p21_p2 = scmp.ge.s32.totalorder %s2189_s13, 4   ;;  %s2407_s24 = smov %s2022_s25 }
 0x387   : > { %s2408_s25 = smov %s2026_s26  ;;  %s2409_s26 = smov %s2205_s17 }
 0x388   : > { %s2410_s27 = smov %s2189_s13  ;;  %23 = sbr.rel (!%p21_p2) target bundleno = 6 (0x6), region = 105 }
 0x38f   :  { %1319 = vsyncpa [#allocation5], 1 }
 0x390   :  { %1321 = vsyncpa [#allocation5 + $0x1], 1 }
 0x391   :  { %1322 = vsyncpa [#allocation8], 1 }
 0x392   :  { %1323 = vsyncpa [#allocation6], 1 }
 0x393   :  { %1325 = vsyncpa [#allocation6 + $0x1], 1 }

</bundles_post_ra>
